<compile_context>
chip_gen: v6e
topology: v6e:2x2x1
jax: 0.10.0
libtpu: 0.0.40
codegen_flags: <defaults>
</compile_context>

<pallas_src>
import functools

import numpy as np
import jax
import jax.numpy as jnp
from jax.experimental import pallas as pl
from jax.experimental.pallas import tpu as pltpu

jax.config.update("jax_default_matmul_precision", "float32")


# ----------------------------------------------------------------------------
# Pallas kernel: fused RPE attention core for one (b, d) block.
# ----------------------------------------------------------------------------
def _rpe_attn_kernel(q_ref, k_ref, v_ref, rk_ref, rq_ref, rv_ref, bias_ref,
                     out_ref, attn_ref, *, scale):
    # q/k/v : [H, T, F]      rk/rq : [H, T, T, F]
    # rv    : [H, T, F, T]   bias  : [T, T]   (additive mask bias, 0 / -1e30)
    q = q_ref[...].astype(jnp.float32)
    k = k_ref[...].astype(jnp.float32)
    v = v_ref[...].astype(jnp.float32)

    # content-content logits, batched over heads (MXU, f32 accumulate)
    logits = jnp.einsum("htf,hsf->hts", q, k,
                        preferred_element_type=jnp.float32)
    # rpe_k bias:  sum_f q[h,t,f] * Rk[b,t,s,h,f]
    logits += jnp.sum(q[:, :, None, :] * rk_ref[...].astype(jnp.float32),
                      axis=-1)
    # rpe_q bias:  sum_f k[h,s,f] * Rq[b,s,t,h,f]
    # (Rq is pre-transposed in glue so this is a minor-axis reduction.)
    logits += jnp.sum(k[:, None, :, :] * rq_ref[...].astype(jnp.float32),
                      axis=-1)
    logits = logits * scale
    logits += bias_ref[...].astype(jnp.float32)[None, :, :]

    # numerically-stable softmax over the key axis, in f32
    m = jnp.max(logits, axis=-1, keepdims=True)
    p = jnp.exp(logits - m)
    denom = jnp.sum(p, axis=-1, keepdims=True)
    attn = p / denom
    attn_ref[...] = attn.astype(attn_ref.dtype)

    # output: attn @ v  (MXU)  +  rpe_v bias
    out = jnp.einsum("hts,hsf->htf", attn, v,
                     preferred_element_type=jnp.float32)
    # rpe_v bias:  sum_s attn[h,t,s] * Rv[b,t,s,h,f]
    # (Rv pre-transposed to [H,T,F,S] -> minor-axis reduction.)
    out += jnp.sum(attn[:, :, None, :] * rv_ref[...].astype(jnp.float32),
                   axis=-1)
    out_ref[...] = out.astype(out_ref.dtype)


def _rpe_attention_core(q, k, v, rk, rq, rv, bias, *, scale):
    """q,k,v: [B,D,H,T,F]; rk,rq: [B,H,T,T,F]; rv: [B,H,T,F,T]; bias: [B,T,T]."""
    B, D, H, T, F = q.shape
    dtype = q.dtype
    kernel = functools.partial(_rpe_attn_kernel, scale=scale)

    flops = 2 * B * D * H * T * T * F * 5          # qk^T, attn@v, 3 RPE terms
    transcendentals = B * D * H * T * T            # exp in softmax
    bytes_accessed = 4 * (3 * B * D * H * T * F    # q, k, v
                          + 3 * B * H * T * T * F  # Rk, Rq, Rv
                          + B * T * T              # mask bias
                          + B * D * H * T * F      # out
                          + B * D * H * T * T)     # attn

    qkv_spec = pl.BlockSpec((None, None, H, T, F), lambda b, d: (b, d, 0, 0, 0))
    r_spec = pl.BlockSpec((None, H, T, T, F), lambda b, d: (b, 0, 0, 0, 0))
    rv_spec = pl.BlockSpec((None, H, T, F, T), lambda b, d: (b, 0, 0, 0, 0))
    bias_spec = pl.BlockSpec((None, T, T), lambda b, d: (b, 0, 0))

    out, attn = pl.pallas_call(
        kernel,
        out_shape=(jax.ShapeDtypeStruct((B, D, H, T, F), dtype),
                   jax.ShapeDtypeStruct((B, D, H, T, T), dtype)),
        grid_spec=pltpu.PrefetchScalarGridSpec(
            num_scalar_prefetch=0,
            grid=(B, D),
            in_specs=[qkv_spec, qkv_spec, qkv_spec, r_spec, r_spec, rv_spec,
                      bias_spec],
            out_specs=(
                pl.BlockSpec((None, None, H, T, F), lambda b, d: (b, d, 0, 0, 0)),
                pl.BlockSpec((None, None, H, T, T), lambda b, d: (b, d, 0, 0, 0)),
            ),
        ),
        compiler_params=pltpu.CompilerParams(
            dimension_semantics=("parallel", "parallel"),
            vmem_limit_bytes=32 * 1024 * 1024),
        cost_estimate=pl.CostEstimate(flops=flops,
                                      transcendentals=transcendentals,
                                      bytes_accessed=bytes_accessed),
    )(q, k, v, rk, rq, rv, bias)
    return out, attn


# ----------------------------------------------------------------------------
# JAX glue mirroring the PyTorch module (norm / linears / RPENet / mask).
# ----------------------------------------------------------------------------
def _group_norm_32(x, weight, bias, *, num_groups=32, eps=1e-5):
    """GroupNorm32 over [N, C, T] (computed in f32, as in improved_diffusion)."""
    N, C, T = x.shape
    G = num_groups
    xf = x.astype(jnp.float32).reshape(N, G, (C // G) * T)
    mean = jnp.mean(xf, axis=-1, keepdims=True)
    var = jnp.mean(jnp.square(xf - mean), axis=-1, keepdims=True)
    xn = ((xf - mean) / jnp.sqrt(var + eps)).reshape(N, C, T)
    return (xn * weight[None, :, None] + bias[None, :, None]).astype(x.dtype)


def _rpe_net_R(p, temb, pairwise_distances, *, num_heads):
    """RPENet.forward -> R[b, t, s, h, f]."""
    d = pairwise_distances.astype(jnp.float32)
    dist_embs = jnp.stack(
        [jnp.log1p(jnp.maximum(d, 0.0)),
         jnp.log1p(jnp.maximum(-d, 0.0)),
         (d == 0).astype(jnp.float32)], axis=-1)                    # [B,T,T,3]
    t_emb = temb.astype(jnp.float32) @ p["time_w"].T + p["time_b"]  # [B,T,C]
    d_emb = dist_embs @ p["dist_w"].T + p["dist_b"]                 # [B,T,T,C]
    emb = t_emb[:, :, None, :] + d_emb
    out = jax.nn.silu(emb) @ p["out_w"].T + p["out_b"]              # [B,T,T,C]
    B, T, _ = pairwise_distances.shape
    C = out.shape[-1]
    return out.reshape(B, T, T, num_heads, C // num_heads)


def _mask_bias(attn_mask, B, T, *, allow_interactions_between_padding=True):
    if attn_mask is None:
        return jnp.zeros((B, T, T), jnp.float32)
    m = attn_mask.astype(jnp.float32)                               # [B, T]
    allowed = m[:, :, None] * m[:, None, :]
    if allow_interactions_between_padding:
        allowed = allowed + (1.0 - m[:, :, None]) * (1.0 - m[:, None, :])
    else:
        allowed = jnp.maximum(allowed, jnp.eye(T, dtype=jnp.float32)[None])
    # -1e30 plays the role of torch's inf mask (exp underflows to exactly 0).
    return jnp.where(allowed > 0, 0.0, -1e30)


def rpe_attention_forward(params, x, temb, frame_indices, attn_mask=None, *,
                          num_heads, allow_interactions_between_padding=True,
                          use_pallas=True):
    """Equivalent of RPEAttention._forward; returns (x_out [B,D,C,T], attn)."""
    B, D, C, T = x.shape
    H = num_heads
    F = C // H
    scale = F ** (-0.5)

    xn = _group_norm_32(x.reshape(B * D, C, T),
                        params["norm_w"], params["norm_b"])
    xn = jnp.transpose(xn.reshape(B, D, C, T), (0, 1, 3, 2))         # [B,D,T,C]

    qkv = xn @ params["qkv_w"].T + params["qkv_b"]                   # [B,D,T,3C]
    qkv = jnp.transpose(qkv.reshape(B, D, T, 3, H, F), (3, 0, 1, 4, 2, 5))
    q, k, v = qkv[0], qkv[1], qkv[2]                                 # [B,D,H,T,F]

    pd = frame_indices[:, :, None] - frame_indices[:, None, :]       # [B,T,T]
    Rq = _rpe_net_R(params["rpe_q"], temb, pd, num_heads=H)          # [B,T,T,H,F]
    Rk = _rpe_net_R(params["rpe_k"], temb, pd, num_heads=H)
    Rv = _rpe_net_R(params["rpe_v"], temb, pd, num_heads=H)
    bias = _mask_bias(
        attn_mask, B, T,
        allow_interactions_between_padding=allow_interactions_between_padding)

    if use_pallas:
        # Pre-transpose R so every in-kernel reduction is over the minor axis.
        rk_t = jnp.transpose(Rk, (0, 3, 1, 2, 4))  # rk_t[b,h,t,s,f] = Rk[b,t,s,h,f]
        rq_t = jnp.transpose(Rq, (0, 3, 2, 1, 4))  # rq_t[b,h,t,s,f] = Rq[b,s,t,h,f]
        rv_t = jnp.transpose(Rv, (0, 3, 1, 4, 2))  # rv_t[b,h,t,f,s] = Rv[b,t,s,h,f]
        out, attn = _rpe_attention_core(q, k, v, rk_t, rq_t, rv_t, bias,
                                        scale=scale)
    else:
        # Pure-JAX reference mirroring the PyTorch einsums (for validation).
        qs = q * scale
        w = jnp.einsum("bdhtf,bdhsf->bdhts", qs, k)
        w += jnp.einsum("bdhtf,btshf->bdhts", qs, Rk)
        w += jnp.swapaxes(
            jnp.einsum("bdhtf,btshf->bdhts", k * scale, Rq), -1, -2)
        w += bias[:, None, None, :, :]
        attn = jax.nn.softmax(w.astype(jnp.float32), axis=-1).astype(x.dtype)
        out = jnp.einsum("bdhts,bdhsf->bdhtf", attn, v)
        out += jnp.einsum("bdhts,btshf->bdhtf", attn, Rv)

    out = jnp.transpose(out, (0, 1, 3, 2, 4)).reshape(B, D, T, C)    # BDTHF->BDTC
    out = out @ params["proj_w"].T + params["proj_b"]
    # NOTE: the reference adds the residual to the *normalized* x (as written
    # in the PyTorch module), not the raw input.
    xo = xn + out
    xo = jnp.transpose(xo, (0, 1, 3, 2))                             # [B,D,C,T]
    return xo, attn


# ----------------------------------------------------------------------------
# Parameter construction + self-check.
# ----------------------------------------------------------------------------
def _init_params(key, C, time_embed_dim):
    def lin(k, out_dim, in_dim, w_scale=0.2):
        kw, kb = jax.random.split(k)
        return (w_scale * jax.random.normal(kw, (out_dim, in_dim), jnp.float32),
                0.1 * jax.random.normal(kb, (out_dim,), jnp.float32))

    def rpe_params(k):
        k1, k2, k3 = jax.random.split(k, 3)
        dw, db = lin(k1, C, 3)
        tw, tb = lin(k2, C, time_embed_dim)
        # torch zero-initializes RPENet.out (training detail); random here so
        # the RPE bias path is actually exercised by the numerical check.
        ow, ob = lin(k3, C, C)
        return {"dist_w": dw, "dist_b": db, "time_w": tw, "time_b": tb,
                "out_w": ow, "out_b": ob}

    ks = jax.random.split(key, 7)
    qkv_w, qkv_b = lin(ks[0], 3 * C, C)
    proj_w, proj_b = lin(ks[1], C, C)   # zero_module in torch init; random here
    norm_w = 1.0 + 0.1 * jax.random.normal(ks[2], (C,), jnp.float32)
    norm_b = 0.1 * jax.random.normal(ks[3], (C,), jnp.float32)
    return {"norm_w": norm_w, "norm_b": norm_b,
            "qkv_w": qkv_w, "qkv_b": qkv_b,
            "proj_w": proj_w, "proj_b": proj_b,
            "rpe_q": rpe_params(ks[4]),
            "rpe_k": rpe_params(ks[5]),
            "rpe_v": rpe_params(ks[6])}


if __name__ == "__main__":
    B, D, C, T = 2, 2, 32, 8
    H = 4
    time_embed_dim = 16

    key = jax.random.PRNGKey(0)
    k_param, kx, kt = jax.random.split(key, 3)
    params = _init_params(k_param, C, time_embed_dim)

    x = jax.random.normal(kx, (B, D, C, T), jnp.float32)
    temb = jax.random.normal(kt, (B, T, time_embed_dim), jnp.float32)
    frame_indices = jnp.array([[0, 1, 2, 3, 5, 8, 13, 21],
                               [4, 5, 6, 7, 8, 9, 10, 11]], jnp.int32)
    attn_mask = jnp.array([[1, 1, 1, 1, 1, 1, 0, 0],
                           [1, 1, 1, 1, 1, 1, 1, 1]], jnp.float32)

    out, attn = rpe_attention_forward(params, x, temb, frame_indices, attn_mask,
                                      num_heads=H, use_pallas=True)
    out = jax.block_until_ready(out)
    attn = jax.block_until_ready(attn)

    ref_out, ref_attn = rpe_attention_forward(params, x, temb, frame_indices,
                                              attn_mask, num_heads=H,
                                              use_pallas=False)
    ref_out = jax.block_until_ready(ref_out)

    assert out.shape == (B, D, C, T)
    assert attn.shape == (B, D, H, T, T)
    np.testing.assert_allclose(np.asarray(attn), np.asarray(ref_attn),
                               rtol=1e-4, atol=1e-4)
    np.testing.assert_allclose(np.asarray(out), np.asarray(ref_out),
                               rtol=1e-4, atol=1e-4)
    print("KERNEL_OK")
</pallas_src>

<mosaic_0001>
module attributes {stable_mosaic.version = 11 : i64} {
  func.func @_rpe_attn_kernel(%arg0: i32, %arg1: i32, %arg2: memref<1x1x4x8x8xf32, #tpu.memory_space<vmem>>, %arg3: memref<1x1x4x8x8xf32, #tpu.memory_space<vmem>>, %arg4: memref<1x1x4x8x8xf32, #tpu.memory_space<vmem>>, %arg5: memref<1x4x8x8x8xf32, #tpu.memory_space<vmem>>, %arg6: memref<1x4x8x8x8xf32, #tpu.memory_space<vmem>>, %arg7: memref<1x4x8x8x8xf32, #tpu.memory_space<vmem>>, %arg8: memref<1x8x8xf32, #tpu.memory_space<vmem>>, %arg9: memref<1x1x4x8x8xf32, #tpu.memory_space<vmem>>, %arg10: memref<1x1x4x8x8xf32, #tpu.memory_space<vmem>>) attributes {dimension_semantics = [#tpu.dimension_semantics<parallel>, #tpu.dimension_semantics<parallel>], iteration_bounds = array<i64: 2, 2>, scalar_prefetch = 0 : i64, scratch_operands = 0 : i64, tpu.core_type = #tpu.core_type<tc>, window_params = [{transform_indices = @transform_0, window_bounds = array<i64: 1, 1, 4, 8, 8>}, {transform_indices = @transform_1, window_bounds = array<i64: 1, 1, 4, 8, 8>}, {transform_indices = @transform_2, window_bounds = array<i64: 1, 1, 4, 8, 8>}, {transform_indices = @transform_3, window_bounds = array<i64: 1, 4, 8, 8, 8>}, {transform_indices = @transform_4, window_bounds = array<i64: 1, 4, 8, 8, 8>}, {transform_indices = @transform_5, window_bounds = array<i64: 1, 4, 8, 8, 8>}, {transform_indices = @transform_6, window_bounds = array<i64: 1, 8, 8>}, {transform_indices = @transform_7, window_bounds = array<i64: 1, 1, 4, 8, 8>}, {transform_indices = @transform_8, window_bounds = array<i64: 1, 1, 4, 8, 8>}]} {
    %c0 = arith.constant 0 : index
    %c0_0 = arith.constant 0 : index
    %c0_1 = arith.constant 0 : index
    %c0_2 = arith.constant 0 : index
    %c0_3 = arith.constant 0 : index
    %0 = vector.load %arg2[%c0, %c0_0, %c0_1, %c0_2, %c0_3] : memref<1x1x4x8x8xf32, #tpu.memory_space<vmem>>, vector<1x1x4x8x8xf32>
    %1 = vector.shape_cast %0 : vector<1x1x4x8x8xf32> to vector<4x8x8xf32>
    %c0_4 = arith.constant 0 : index
    %c0_5 = arith.constant 0 : index
    %c0_6 = arith.constant 0 : index
    %c0_7 = arith.constant 0 : index
    %c0_8 = arith.constant 0 : index
    %2 = vector.load %arg3[%c0_4, %c0_5, %c0_6, %c0_7, %c0_8] : memref<1x1x4x8x8xf32, #tpu.memory_space<vmem>>, vector<1x1x4x8x8xf32>
    %3 = vector.shape_cast %2 : vector<1x1x4x8x8xf32> to vector<4x8x8xf32>
    %c0_9 = arith.constant 0 : index
    %c0_10 = arith.constant 0 : index
    %c0_11 = arith.constant 0 : index
    %c0_12 = arith.constant 0 : index
    %c0_13 = arith.constant 0 : index
    %4 = vector.load %arg4[%c0_9, %c0_10, %c0_11, %c0_12, %c0_13] : memref<1x1x4x8x8xf32, #tpu.memory_space<vmem>>, vector<1x1x4x8x8xf32>
    %5 = vector.shape_cast %4 : vector<1x1x4x8x8xf32> to vector<4x8x8xf32>
    "tpu.trace_start"() <{level = 10 : i32, message = "htf,hsf->hts"}> : () -> ()
    %cst = arith.constant dense<0.000000e+00> : vector<4x8x8xf32>
    %6 = tpu.matmul %1, %3, %cst {dimension_numbers = #tpu.dot_dimension_numbers<[2], [2], [1], [1], [0, 0, 0, 1, 1, 1], [0], [0]>, precision = #tpu.contract_precision<fp32>} : vector<4x8x8xf32>, vector<4x8x8xf32>, vector<4x8x8xf32> -> vector<4x8x8xf32>
    "tpu.trace_stop"() : () -> ()
    %7 = vector.shape_cast %1 : vector<4x8x8xf32> to vector<4x8x1x8xf32>
    %c0_14 = arith.constant 0 : index
    %c0_15 = arith.constant 0 : index
    %c0_16 = arith.constant 0 : index
    %c0_17 = arith.constant 0 : index
    %c0_18 = arith.constant 0 : index
    %8 = vector.load %arg5[%c0_14, %c0_15, %c0_16, %c0_17, %c0_18] : memref<1x4x8x8x8xf32, #tpu.memory_space<vmem>>, vector<1x4x8x8x8xf32>
    %9 = vector.shape_cast %8 : vector<1x4x8x8x8xf32> to vector<4x8x8x8xf32>
    %10 = vector.broadcast %7 : vector<4x8x1x8xf32> to vector<4x8x8x8xf32>
    %11 = arith.mulf %10, %9 : vector<4x8x8x8xf32>
    %cst_19 = arith.constant dense<0.000000e+00> : vector<4x8x8xf32>
    %12 = vector.multi_reduction <add>, %11, %cst_19 [3] : vector<4x8x8x8xf32> to vector<4x8x8xf32>
    %13 = arith.addf %6, %12 : vector<4x8x8xf32>
    %14 = vector.shape_cast %3 : vector<4x8x8xf32> to vector<4x1x8x8xf32>
    %c0_20 = arith.constant 0 : index
    %c0_21 = arith.constant 0 : index
    %c0_22 = arith.constant 0 : index
    %c0_23 = arith.constant 0 : index
    %c0_24 = arith.constant 0 : index
    %15 = vector.load %arg6[%c0_20, %c0_21, %c0_22, %c0_23, %c0_24] : memref<1x4x8x8x8xf32, #tpu.memory_space<vmem>>, vector<1x4x8x8x8xf32>
    %16 = vector.shape_cast %15 : vector<1x4x8x8x8xf32> to vector<4x8x8x8xf32>
    %17 = vector.broadcast %14 : vector<4x1x8x8xf32> to vector<4x8x8x8xf32>
    %18 = arith.mulf %17, %16 : vector<4x8x8x8xf32>
    %cst_25 = arith.constant dense<0.000000e+00> : vector<4x8x8xf32>
    %19 = vector.multi_reduction <add>, %18, %cst_25 [3] : vector<4x8x8x8xf32> to vector<4x8x8xf32>
    %20 = arith.addf %13, %19 : vector<4x8x8xf32>
    %cst_26 = arith.constant 0.353553385 : f32
    %21 = vector.broadcast %cst_26 : f32 to vector<4x8x8xf32>
    %22 = arith.mulf %20, %21 : vector<4x8x8xf32>
    %c0_27 = arith.constant 0 : index
    %c0_28 = arith.constant 0 : index
    %c0_29 = arith.constant 0 : index
    %23 = vector.load %arg8[%c0_27, %c0_28, %c0_29] : memref<1x8x8xf32, #tpu.memory_space<vmem>>, vector<1x8x8xf32>
    %24 = vector.shape_cast %23 : vector<1x8x8xf32> to vector<8x8xf32>
    %25 = vector.shape_cast %24 : vector<8x8xf32> to vector<1x8x8xf32>
    %26 = vector.broadcast %25 : vector<1x8x8xf32> to vector<4x8x8xf32>
    %27 = arith.addf %22, %26 : vector<4x8x8xf32>
    %cst_30 = arith.constant dense<0xFF800000> : vector<4x8xf32>
    %28 = vector.multi_reduction <maximumf>, %27, %cst_30 [2] : vector<4x8x8xf32> to vector<4x8xf32>
    %29 = vector.shape_cast %28 : vector<4x8xf32> to vector<4x8x1xf32>
    %30 = vector.broadcast %29 : vector<4x8x1xf32> to vector<4x8x8xf32>
    %31 = arith.subf %27, %30 : vector<4x8x8xf32>
    %32 = math.exp %31 : vector<4x8x8xf32>
    %cst_31 = arith.constant dense<0.000000e+00> : vector<4x8xf32>
    %33 = vector.multi_reduction <add>, %32, %cst_31 [2] : vector<4x8x8xf32> to vector<4x8xf32>
    %34 = vector.shape_cast %33 : vector<4x8xf32> to vector<4x8x1xf32>
    %35 = vector.broadcast %34 : vector<4x8x1xf32> to vector<4x8x8xf32>
    %36 = arith.divf %32, %35 : vector<4x8x8xf32>
    %c0_32 = arith.constant 0 : index
    %c0_33 = arith.constant 0 : index
    %c0_34 = arith.constant 0 : index
    %c0_35 = arith.constant 0 : index
    %c0_36 = arith.constant 0 : index
    %37 = vector.load %arg10[%c0_32, %c0_33, %c0_34, %c0_35, %c0_36] : memref<1x1x4x8x8xf32, #tpu.memory_space<vmem>>, vector<1x1x4x8x8xf32>
    %38 = vector.shape_cast %37 : vector<1x1x4x8x8xf32> to vector<4x8x8xf32>
    %39 = vector.shape_cast %36 : vector<4x8x8xf32> to vector<1x1x4x8x8xf32>
    tpu.vector_store %arg10[%c0_32, %c0_33, %c0_34, %c0_35, %c0_36], %39 {strides = array<i32>} : memref<1x1x4x8x8xf32, #tpu.memory_space<vmem>>, vector<1x1x4x8x8xf32>,
    "tpu.trace_start"() <{level = 10 : i32, message = "hts,hsf->htf"}> : () -> ()
    %cst_37 = arith.constant dense<0.000000e+00> : vector<4x8x8xf32>
    %40 = tpu.matmul %36, %5, %cst_37 {dimension_numbers = #tpu.dot_dimension_numbers<[2], [1], [1], [2], [0, 0, 0, 1, 1, 2], [0], [0]>, precision = #tpu.contract_precision<fp32>} : vector<4x8x8xf32>, vector<4x8x8xf32>, vector<4x8x8xf32> -> vector<4x8x8xf32>
    "tpu.trace_stop"() : () -> ()
    %41 = vector.shape_cast %36 : vector<4x8x8xf32> to vector<4x8x1x8xf32>
    %c0_38 = arith.constant 0 : index
    %c0_39 = arith.constant 0 : index
    %c0_40 = arith.constant 0 : index
    %c0_41 = arith.constant 0 : index
    %c0_42 = arith.constant 0 : index
    %42 = vector.load %arg7[%c0_38, %c0_39, %c0_40, %c0_41, %c0_42] : memref<1x4x8x8x8xf32, #tpu.memory_space<vmem>>, vector<1x4x8x8x8xf32>
    %43 = vector.shape_cast %42 : vector<1x4x8x8x8xf32> to vector<4x8x8x8xf32>
    %44 = vector.broadcast %41 : vector<4x8x1x8xf32> to vector<4x8x8x8xf32>
    %45 = arith.mulf %44, %43 : vector<4x8x8x8xf32>
    %cst_43 = arith.constant dense<0.000000e+00> : vector<4x8x8xf32>
    %46 = vector.multi_reduction <add>, %45, %cst_43 [3] : vector<4x8x8x8xf32> to vector<4x8x8xf32>
    %47 = arith.addf %40, %46 : vector<4x8x8xf32>
    %c0_44 = arith.constant 0 : index
    %c0_45 = arith.constant 0 : index
    %c0_46 = arith.constant 0 : index
    %c0_47 = arith.constant 0 : index
    %c0_48 = arith.constant 0 : index
    %48 = vector.load %arg9[%c0_44, %c0_45, %c0_46, %c0_47, %c0_48] : memref<1x1x4x8x8xf32, #tpu.memory_space<vmem>>, vector<1x1x4x8x8xf32>
    %49 = vector.shape_cast %48 : vector<1x1x4x8x8xf32> to vector<4x8x8xf32>
    %50 = vector.shape_cast %47 : vector<4x8x8xf32> to vector<1x1x4x8x8xf32>
    tpu.vector_store %arg9[%c0_44, %c0_45, %c0_46, %c0_47, %c0_48], %50 {strides = array<i32>} : memref<1x1x4x8x8xf32, #tpu.memory_space<vmem>>, vector<1x1x4x8x8xf32>,
    return
  }
  func.func @transform_0(%arg0: i32, %arg1: i32) -> (i32, i32, i32, i32, i32) {
    %c0_i32 = arith.constant 0 : i32
    %c0_i32_0 = arith.constant 0 : i32
    %c0_i32_1 = arith.constant 0 : i32
    %c0_i32_2 = arith.constant 0 : i32
    return %arg0, %arg1, %c0_i32, %c0_i32_0, %c0_i32_1 : i32, i32, i32, i32, i32
  }
  func.func @transform_1(%arg0: i32, %arg1: i32) -> (i32, i32, i32, i32, i32) {
    %c0_i32 = arith.constant 0 : i32
    %c0_i32_0 = arith.constant 0 : i32
    %c0_i32_1 = arith.constant 0 : i32
    %c0_i32_2 = arith.constant 0 : i32
    return %arg0, %arg1, %c0_i32, %c0_i32_0, %c0_i32_1 : i32, i32, i32, i32, i32
  }
  func.func @transform_2(%arg0: i32, %arg1: i32) -> (i32, i32, i32, i32, i32) {
    %c0_i32 = arith.constant 0 : i32
    %c0_i32_0 = arith.constant 0 : i32
    %c0_i32_1 = arith.constant 0 : i32
    %c0_i32_2 = arith.constant 0 : i32
    return %arg0, %arg1, %c0_i32, %c0_i32_0, %c0_i32_1 : i32, i32, i32, i32, i32
  }
  func.func @transform_3(%arg0: i32, %arg1: i32) -> (i32, i32, i32, i32, i32) {
    %c0_i32 = arith.constant 0 : i32
    %c0_i32_0 = arith.constant 0 : i32
    %c0_i32_1 = arith.constant 0 : i32
    %c0_i32_2 = arith.constant 0 : i32
    %c0_i32_3 = arith.constant 0 : i32
    return %arg0, %c0_i32, %c0_i32_0, %c0_i32_1, %c0_i32_2 : i32, i32, i32, i32, i32
  }
  func.func @transform_4(%arg0: i32, %arg1: i32) -> (i32, i32, i32, i32, i32) {
    %c0_i32 = arith.constant 0 : i32
    %c0_i32_0 = arith.constant 0 : i32
    %c0_i32_1 = arith.constant 0 : i32
    %c0_i32_2 = arith.constant 0 : i32
    %c0_i32_3 = arith.constant 0 : i32
    return %arg0, %c0_i32, %c0_i32_0, %c0_i32_1, %c0_i32_2 : i32, i32, i32, i32, i32
  }
  func.func @transform_5(%arg0: i32, %arg1: i32) -> (i32, i32, i32, i32, i32) {
    %c0_i32 = arith.constant 0 : i32
    %c0_i32_0 = arith.constant 0 : i32
    %c0_i32_1 = arith.constant 0 : i32
    %c0_i32_2 = arith.constant 0 : i32
    %c0_i32_3 = arith.constant 0 : i32
    return %arg0, %c0_i32, %c0_i32_0, %c0_i32_1, %c0_i32_2 : i32, i32, i32, i32, i32
  }
  func.func @transform_6(%arg0: i32, %arg1: i32) -> (i32, i32, i32) {
    %c0_i32 = arith.constant 0 : i32
    %c0_i32_0 = arith.constant 0 : i32
    %c0_i32_1 = arith.constant 0 : i32
    return %arg0, %c0_i32, %c0_i32_0 : i32, i32, i32
  }
  func.func @transform_7(%arg0: i32, %arg1: i32) -> (i32, i32, i32, i32, i32) {
    %c0_i32 = arith.constant 0 : i32
    %c0_i32_0 = arith.constant 0 : i32
    %c0_i32_1 = arith.constant 0 : i32
    %c0_i32_2 = arith.constant 0 : i32
    return %arg0, %arg1, %c0_i32, %c0_i32_0, %c0_i32_1 : i32, i32, i32, i32, i32
  }
  func.func @transform_8(%arg0: i32, %arg1: i32) -> (i32, i32, i32, i32, i32) {
    %c0_i32 = arith.constant 0 : i32
    %c0_i32_0 = arith.constant 0 : i32
    %c0_i32_1 = arith.constant 0 : i32
    %c0_i32_2 = arith.constant 0 : i32
    return %arg0, %arg1, %c0_i32, %c0_i32_0, %c0_i32_1 : i32, i32, i32, i32, i32
  }
}

</mosaic_0001>

<bundles_post_ra>
// kernel: tpu_custom_call.1
= control target key start
LH: loop header
LB: loop body
LE: loop exit
PB: predicated region body
PF: predicated region fallthrough
CT: control target
= control target key end

     0   :  { %s8909_s0 = inlined_call_operand.hbm [shape: f32[2,2,4,8,8], index: 0, kind: input, shape index: {}]   ;;  %s8910_s1 = inlined_call_operand.hbm [shape: f32[2,2,4,8,8], index: 1, kind: input, shape index: {}]   ;;  %s8911_s2 = inlined_call_operand.hbm [shape: f32[2,2,4,8,8], index: 2, kind: input, shape index: {}]   ;;  %s8912_s3 = inlined_call_operand.hbm [shape: f32[2,4,8,8,8], index: 3, kind: input, shape index: {}]   ;;  %s8913_s4 = inlined_call_operand.hbm [shape: f32[2,4,8,8,8], index: 4, kind: input, shape index: {}]   ;;  %s8914_s5 = inlined_call_operand.hbm [shape: f32[2,4,8,8,8], index: 5, kind: input, shape index: {}]   ;;  %s8915_s6 = inlined_call_operand.hbm [shape: f32[2,8,8], index: 6, kind: input, shape index: {}]   ;;  %s8916_s7 = inlined_call_operand.hbm [shape: f32[2,2,4,8,8], index: 7, kind: output, shape index: {0}]   ;;  %s8917_s8 = inlined_call_operand.hbm [shape: f32[2,2,4,8,8], index: 8, kind: output, shape index: {1}]  }
   0x1   :  { %8949 = sst [smem:[#allocation39_spill]] %s8910_s1 }
   0x2   :  { %8950 = sst [smem:[#allocation40_spill]] %s8912_s3 }
   0x3   :  { %8951 = sst [smem:[#allocation41_spill]] %s8914_s5 }
   0x4   :  { %8952 = sst [smem:[#allocation42_spill]] %s8916_s7 }
   0x5   :  { %8953 = sst [smem:[#allocation43_spill]] %s8917_s8 }
   0x6   :  { %14 = vsyncpa [#allocation3], 0 }
   0x7   :  { %16 = vsyncpa [#allocation3 + $0x1], 0 }
   0x8   :  { %17 = vsyncpa [#allocation6], 0 }
   0x9   :  { %19 = vsyncpa [#allocation6 + $0x1], 0 }
   0xa   :  { %20 = vsyncpa [#allocation9], 0 }
   0xb   :  { %22 = vsyncpa [#allocation9 + $0x1], 0 }
   0xc   :  { %23 = vsyncpa [#allocation12], 0 }
   0xd   :  { %25 = vsyncpa [#allocation12 + $0x1], 0 }
   0xe   :  { %26 = vsyncpa [#allocation4], 0 }
   0xf   :  { %28 = vsyncpa [#allocation4 + $0x1], 0 }
  0x10   :  { %29 = vsyncpa [#allocation16], 0 }
  0x11   :  { %31 = vsyncpa [#allocation16 + $0x1], 0  ;;  %s7320_s27 = smov 0   ;;  %s7322_s28 = smov 0  }
  0x12   :  { %s7324_s29 = smov 0   ;;  %s7326_s30 = smov 0  }
  0x13   :  { %s7328_s9 = smov 0   ;;  %s7330_s10 = smov 0  }
  0x14   :  { %s7332_s11 = smov 0   ;;  %s7334_s12 = smov 0  }
  0x15   :  { %s7336_s13 = smov 0   ;;  %s7338_s14 = smov 0  }
  0x16   :  { %s7340_s15 = smov 0  }
  0x17 LB: > { %8954 = sst [smem:[#allocation23_spill]] %s7221_s28  ;;  %s7376_s16 = sadd.s32 4294967295, %s7257_s15   ;;  %s7257_s15 = sphi %s7340_s15, %s37_s15   ;;  %s7253_s14 = sphi %s7338_s14, %s9024_s14   ;;  %s7249_s13 = sphi %s7336_s13, %s9016_s13   ;;  %s7245_s12 = sphi %s7334_s12, %s9023_s12   ;;  %s7241_s11 = sphi %s7332_s11, %s9015_s11   ;;  %s7237_s10 = sphi %s7330_s10, %s9022_s10   ;;  %s7233_s9 = sphi %s7328_s9, %s9021_s9   ;;  %s7229_s30 = sphi %s7326_s30, %s9020_s30   ;;  %s7225_s29 = sphi %s7324_s29, %s9019_s29   ;;  %s7221_s28 = sphi %s7322_s28, %s9018_s28   ;;  %s7217_s27 = sphi %s7320_s27, %s9011_s27  }
  0x18   : > { %8955 = sst [smem:[#allocation24_spill]] %s7229_s30  ;;  %s6350_s17 = sadd.s32 4294967294, %s7257_s15  }
  0x19   : > { %8956 = sst [smem:[#allocation25_spill]] %s7233_s9  ;;  %s46_s18 = sadd.s32 1, %s7249_s13 }
  0x1a   : > { %8957 = sst [smem:[#allocation26_spill]] %s7241_s11  ;;  %s49_s19 = sadd.s32 1, %s7253_s14 }
  0x1b   : > { %8958 = sst [smem:[#allocation27_spill]] %s7245_s12  ;;  %p47_p0 = scmp.ge.s32.totalorder %s46_s18, 2 }
  0x1c   : > { %8959 = sst [smem:[#allocation28_spill]] %s7249_s13  ;;  %s58_s20 = sadd.s32 1, %s7237_s10 }
  0x1d   : > { %8960 = sst [smem:[#allocation29_spill]] %s7257_s15  ;;  %p65_p1 = scmp.ne.s32.totalorder %s7237_s10, %s7233_s9 }
  0x1e   : > { %8961 = sst [smem:[#allocation30_spill]] %s7376_s16  ;;  %p8930_p2 = scmp.eq.s32.totalorder %s7257_s15, 0 }
  0x1f   : > { %s9026_s18 = smov (%p47_p0, %s46_s18), 0  ;;  %s9028_s19 = smov (!%p47_p0, %s49_s19), %s7253_s14 }
  0x20   : > { %8962 = sst [smem:[#allocation31_spill]] %s9026_s18  ;;  %s54_s21 = ssub.s32 %s7249_s13, %s9026_s18 }
  0x21   : > { %p7392_p3 = por %p8930_p2, %p65_p1  ;;  %p51_p4 = scmp.ge.s32.totalorder %s9028_s19, 2 }
  0x22   : > { %p71_p5 = scmp.ne.s32.totalorder %s7233_s9, %s7229_s30  ;;  %p8929_p6 = scmp.eq.s32.totalorder %s7376_s16, 0 }
  0x23   : > { %p257_p7 = scmp.eq.s32.totalorder %s7376_s16, 3  ;;  %s9030_s19 = smov (%p51_p4, %s9028_s19), 0 }
  0x24   : > { %8964 = sst [smem:[#allocation32_spill]] %s9030_s19  ;;  %p7404_p8 = por %p8929_p6, %p71_p5 }
  0x25   : > { %p7408_p9 = por %p257_p7, %p65_p1  ;;  %s7414_s25 = ssub.s32 %s7253_s14, %s9030_s19 }
  0x26   : > { %s8965_s23 = scalar_select %p7404_p8, 1, 0 }
  0x27   : > { %s8967_s24 = scalar_select %p7408_p9, 1, 0 }
  0x28   : > { %8966 = sst [smem:[#allocation33_spill]] %s8965_s23  ;;  %p263_p10 = scmp.eq.s32.totalorder %s6350_s17, 3 }
  0x29   : > { %8968 = sst [smem:[#allocation34_spill]] %s8967_s24  ;;  %s55_s26 = sor.u32 %s54_s21, %s7414_s25 }
  0x2a   : > { %p56_p12 = scmp.eq.s32.totalorder %s55_s26, 0  ;;  %p7418_p13 = por %p263_p10, %p71_p5 }
  0x2b   : > { %p8928_p0 = scmp.lt.s32.totalorder %s7257_s15, 4  ;;  %s8926_s7 = sand.u32 1, %s7237_s10  }
  0x2c   : > { %s8969_s18 = scalar_select %p7418_p13, 1, 0 }
  0x2d   : > { %s7424_s30 = scalar_select %p56_p12, %s7237_s10, %s58_s20  }
  0x2e   : > { %8970 = sst [smem:[#allocation35_spill]] %s8969_s18  ;;  %s6354_s8 = sshll.u32 %s7249_s13, 2 }
  0x2f   : > { %8971 = sst [smem:[#allocation36_spill]] %s7424_s30  ;;  %s7430_s19 = sshll.u32 %s8926_s7, 5 }
  0x30   : > { %s6355_s24 = sshll.u32 %s7253_s14, 3  ;;  %p7437_p1 = pnand %p8928_p0, %p7392_p3 }
  0x31   : > { %s321_s17 = sadd.s32 %s6355_s24, %s6354_s8  ;;  %s7444_s20 = sand.u32 1, %s7257_s15  }
  0x32   : > { %s7441_s26 = sshll.u32 %s321_s17, 7  ;;  %s8973_s1 = sld [smem:[#allocation39_spill]] }
  0x33   : > { %s338_s18 = scalar_lea.vmem [#allocation5], %s7430_s19  ;;  %p6376_p4 = scmp.ge.s32.totalorder %s7257_s15, 1 }
  0x34   : > { %s347_s8 = sshll.u32 %s338_s18, 4  ;;  %p459_p3 = scmp.lt.s32.totalorder %s7257_s15, 5  ;;  %s348_s8 = int_to_ptr.vmem [resolvable:$true] %s347_s8 }
  0x35   : > { %s8932_s22 = scalar_lea.sflag [#allocation6], %s7444_s20  ;;  %p8931_p5 = pneg %p7437_p1 }
  0x36   : > { %s6912_s24 = scalar_lea.vmem %s348_s8, 512  ;;  %s7259_s17 = smov [#allocation5]  }
  0x37   : > { %p6913_p7 = scmp.ne.s32.totalorder %s348_s8, %s6912_s24  ;;  %s6917_s12 = sshll.u32 %s7259_s17, 4  ;;  %s6918_s12 = int_to_ptr.vmem [resolvable:$false] %s6917_s12 }
  0x38   : > { %s346_s7 = scalar_lea.hbm %s8973_s1, %s7441_s26  ;;  %s6919_s30 = scalar_lea.vmem %s6918_s12, 1024 }
  0x39   : > { %p6915_p10 = pnand %p6913_p7, %p8931_p5  ;;  %p6920_p0 = scmp.lt.s32.totalorder %s348_s8, %s6918_s12 }
  0x3a   : > { %p6921_p6 = scmp.lt.s32.totalorder %s6919_s30, %s6912_s24 }
  0x3b   : > { %p6916_p12 = pneg %p6915_p10 }
  0x3c   : > { %p6922_p2 = por %p6921_p6, %p6920_p0 }
  0x3e   : > { %p6923_p11 = pnand %p6922_p2, %p6916_p12 }
  0x40   : > { %6926 = shalt.err (!%p6923_p11)
}
  0x41   : > { %s8933_s13 = smov 128   ;;  %s8935_s12 = smov 8  }
  0x42   : > { %6759 = dma.hbm_to_vmem [thread:$0]  (!%p7437_p1), %s346_s7, 512, %s348_s8, %s8932_s22, %s8933_s13, %s8933_s13, %s8935_s12  }
  0x43   : > { %p7470_p2 = pnand %p6376_p4, %p459_p3  ;;  %s140_s24 = sadd.s32 1, %s7225_s29 }
  0x44   : > { %p8975_p6 = scmp.eq.s32.totalorder %s7414_s25, 0  ;;  %p147_p11 = scmp.ne.s32.totalorder %s7225_s29, %s7221_s28 }
  0x45   : > { %p153_p0 = scmp.ne.s32.totalorder %s7221_s28, %s7217_s27  ;;  %s8937_s30 = sand.u32 1, %s7225_s29  }
  0x46   : > { %s7478_s17 = scalar_select %p8975_p6, %s7225_s29, %s140_s24  }
  0x47   : > { %p8977_p7 = scmp.eq.s32.totalorder %s7257_s15, 0  ;;  %p8978_p12 = scmp.eq.s32.totalorder %s7376_s16, 0 }
  0x48   : > { %8976 = sst [smem:[#allocation37_spill]] %s7478_s17  ;;  %s7495_s7 = sshll.u32 %s8937_s30, 8 }
  0x49   : > { %p149_p10 = por %p147_p11, %p8977_p7  ;;  %p7489_p5 = por %p153_p0, %p8978_p12 }
  0x4a   : > { %s7498_s8 = sshll.u32 %s7253_s14, 12  ;;  %s8981_s3 = sld [smem:[#allocation40_spill]] }
  0x4b   : > { %s8979_s1 = scalar_select %p7489_p5, 1, 0 }
  0x4c   : > { %s384_s27 = scalar_lea.vmem [#allocation8], %s7495_s7  ;;  %p8982_p4 = scmp.lt.s32.totalorder %s7257_s15, 4 }
  0x4d   : > { %8980 = sst [smem:[#allocation38_spill]] %s8979_s1  ;;  %s391_s13 = sshll.u32 %s384_s27, 4  ;;  %s392_s13 = int_to_ptr.vmem [resolvable:$true] %s391_s13 }
  0x4e   : > { %p7507_p3 = pnand %p8982_p4, %p149_p10  ;;  %s6940_s17 = scalar_lea.vmem %s392_s13, 4096 }
  0x4f   : > { %p6941_p11 = scmp.ne.s32.totalorder %s392_s13, %s6940_s17  ;;  %s7262_s25 = smov [#allocation8]  }
  0x50   : > { %s390_s22 = scalar_lea.hbm %s8981_s3, %s7498_s8  ;;  %p8948_p6 = pneg %p7507_p3 }
  0x51   : > { %s6945_s24 = sshll.u32 %s7262_s25, 4  ;;  %s6946_s24 = int_to_ptr.vmem [resolvable:$false] %s6945_s24 }
  0x52   : > { %p6943_p0 = pnand %p6941_p11, %p8948_p6  ;;  %s6947_s27 = scalar_lea.vmem %s6946_s24, 8192 }
  0x53   : > { %p6948_p10 = scmp.lt.s32.totalorder %s392_s13, %s6946_s24  ;;  %p6949_p12 = scmp.lt.s32.totalorder %s6947_s27, %s6940_s17 }
  0x54   : > { %p6944_p7 = pneg %p6943_p0 }
  0x55   : > { %p6950_p4 = por %p6949_p12, %p6948_p10 }
  0x57   : > { %p6951_p13 = pnand %p6950_p4, %p6944_p7 }
  0x59   : > { %6954 = shalt.err (!%p6951_p13)
}
  0x5a   : > { %s8984_s30 = smov 8   ;;  %s8985_s3 = smov 128  }
  0x5b   : > { %s8986_s15 = scalar_lea.sflag [#allocation9], %s7444_s20  ;;  %s8987_s5 = sld [smem:[#allocation41_spill]] }
  0x5c   : > { %6765 = dma.hbm_to_vmem [thread:$0]  (!%p7507_p3), %s390_s22, 4096, %s392_s13, %s8986_s15, %s8985_s3, %s8985_s3, %s8984_s30  }
  0x5d   : > { %s426_s17 = scalar_lea.vmem [#allocation11], %s7495_s7  ;;  %s423_s1 = scalar_lea.sflag [#allocation12], %s7444_s20 }
  0x5e   : > { %s433_s27 = sshll.u32 %s426_s17, 4  ;;  %s7263_s16 = smov [#allocation11]   ;;  %s434_s27 = int_to_ptr.vmem [resolvable:$true] %s433_s27 }
  0x5f   : > { %s6968_s28 = scalar_lea.vmem %s434_s27, 4096  ;;  %s6973_s23 = sshll.u32 %s7263_s16, 4  ;;  %s6974_s23 = int_to_ptr.vmem [resolvable:$false] %s6973_s23 }
  0x60   : > { %p6969_p13 = scmp.ne.s32.totalorder %s434_s27, %s6968_s28  ;;  %s6975_s9 = scalar_lea.vmem %s6974_s23, 8192 }
  0x61   : > { %s432_s24 = scalar_lea.hbm %s8987_s5, %s7498_s8  ;;  %p6976_p7 = scmp.lt.s32.totalorder %s434_s27, %s6974_s23 }
  0x62   : > { %p6971_p11 = pnand %p6969_p13, %p8948_p6  ;;  %p6977_p10 = scmp.lt.s32.totalorder %s6975_s9, %s6968_s28 }
  0x64   : > { %p6972_p0 = pneg %p6971_p11  ;;  %p6978_p12 = por %p6977_p10, %p6976_p7 }
  0x66   : > { %p6979_p4 = pnand %p6978_p12, %p6972_p0 }
  0x68   : > { %6982 = shalt.err (!%p6979_p4)
}
  0x69   : > { %6771 = dma.hbm_to_vmem [thread:$0]  (!%p7507_p3), %s432_s24, 4096, %s434_s27, %s423_s1, %s8985_s3, %s8985_s3, %s8984_s30  }
  0x6a   : > { %s323_s28 = scalar_lea.hbm %s8909_s0, %s7441_s26  ;;  %s315_s9 = scalar_lea.vmem [#allocation2], %s7430_s19 }
  0x6b   : > { %s324_s16 = sshll.u32 %s315_s9, 4  ;;  %s369_s13 = scalar_lea.hbm %s8911_s2, %s7441_s26  ;;  %s325_s16 = int_to_ptr.vmem [resolvable:$true] %s324_s16 }
  0x6c   : > { %s8988_s25 = sand.u32 1, %s7237_s10   ;;  %s6996_s5 = scalar_lea.vmem %s325_s16, 512 }
  0x6d   : > { %s312_s17 = scalar_lea.sflag [#allocation3], %s8988_s25  ;;  %p6997_p13 = scmp.ne.s32.totalorder %s325_s16, %s6996_s5 }
  0x6e   : > { %p8989_p11 = pneg %p7437_p1  ;;  %s7264_s24 = smov [#allocation2]  }
  0x6f   : > { %s7001_s27 = sshll.u32 %s7264_s24, 4  ;;  %s7002_s27 = int_to_ptr.vmem [resolvable:$false] %s7001_s27 }
  0x70   : > { %p6999_p0 = pnand %p6997_p13, %p8989_p11  ;;  %s7003_s11 = scalar_lea.vmem %s7002_s27, 1024 }
  0x71   : > { %p7004_p10 = scmp.lt.s32.totalorder %s325_s16, %s7002_s27  ;;  %p7005_p12 = scmp.lt.s32.totalorder %s7003_s11, %s6996_s5 }
  0x72   : > { %p7000_p7 = pneg %p6999_p0 }
  0x73   : > { %p7006_p4 = por %p7005_p12, %p7004_p10 }
  0x75   : > { %p7007_p6 = pnand %p7006_p4, %p7000_p7 }
  0x77   : > { %7010 = shalt.err (!%p7007_p6)
}
  0x78   : > { %6756 = dma.hbm_to_vmem [thread:$0]  (!%p7437_p1), %s323_s28, 512, %s325_s16, %s312_s17, %s8985_s3, %s8985_s3, %s8984_s30  }
  0x79   : > { %s361_s15 = scalar_lea.vmem [#allocation7], %s7430_s19  ;;  %s411_s25 = scalar_lea.hbm %s8913_s4, %s7498_s8 }
  0x7a   : > { %s370_s9 = sshll.u32 %s361_s15, 4  ;;  %p8990_p6 = pmov %p8989_p11  ;;  %s371_s9 = int_to_ptr.vmem [resolvable:$true] %s370_s9 }
  0x7b   : > { %s7024_s5 = scalar_lea.vmem %s371_s9, 512  ;;  %s7265_s24 = smov [#allocation7]  }
  0x7c   : > { %p7025_p13 = scmp.ne.s32.totalorder %s371_s9, %s7024_s5  ;;  %s7029_s27 = sshll.u32 %s7265_s24, 4  ;;  %s7030_s27 = int_to_ptr.vmem [resolvable:$false] %s7029_s27 }
  0x7d   : > { %s7031_s11 = scalar_lea.vmem %s7030_s27, 1024  ;;  %p7032_p7 = scmp.lt.s32.totalorder %s371_s9, %s7030_s27 }
  0x7e   : > { %p7027_p11 = pnand %p7025_p13, %p8990_p6  ;;  %p7033_p10 = scmp.lt.s32.totalorder %s7031_s11, %s7024_s5 }
  0x80   : > { %p7028_p0 = pneg %p7027_p11  ;;  %p7034_p12 = por %p7033_p10, %p7032_p7 }
  0x82   : > { %p7035_p4 = pnand %p7034_p12, %p7028_p0 }
  0x84   : > { %7038 = shalt.err (!%p7035_p4)
}
  0x85   : > { %s8991_s19 = scalar_lea.sflag [#allocation6], %s7444_s20  ;;  %s405_s17 = scalar_lea.vmem [#allocation10], %s7495_s7 }
  0x86   : > { %6762 = dma.hbm_to_vmem [thread:$0]  (!%p7437_p1), %s369_s13, 512, %s371_s9, %s8991_s19, %s8985_s3, %s8985_s3, %s8984_s30  }
  0x87   : > { %s412_s15 = sshll.u32 %s405_s17, 4  ;;  %s8992_s23 = sand.u32 1, %s7225_s29   ;;  %s413_s15 = int_to_ptr.vmem [resolvable:$true] %s412_s15 }
  0x88   : > { %s6374_s22 = sshll.u32 %s8992_s23, 3  ;;  %s7052_s21 = scalar_lea.vmem %s413_s15, 4096 }
  0x89   : > { %p7053_p13 = scmp.ne.s32.totalorder %s413_s15, %s7052_s21  ;;  %p8993_p6 = pneg %p7507_p3 }
  0x8a   : > { %s7266_s5 = smov [#allocation10]  }
  0x8b   : > { %p7055_p11 = pnand %p7053_p13, %p8993_p6  ;;  %s7057_s24 = sshll.u32 %s7266_s5, 4  ;;  %s7058_s24 = int_to_ptr.vmem [resolvable:$false] %s7057_s24 }
  0x8c   : > { %s7059_s27 = scalar_lea.vmem %s7058_s24, 8192  ;;  %p7060_p7 = scmp.lt.s32.totalorder %s413_s15, %s7058_s24 }
  0x8d   : > { %p7056_p0 = pneg %p7055_p11  ;;  %p7061_p10 = scmp.lt.s32.totalorder %s7059_s27, %s7052_s21 }
  0x8f   : > { %p7062_p12 = por %p7061_p10, %p7060_p7 }
  0x91   : > { %p7063_p4 = pnand %p7062_p12, %p7056_p0 }
  0x93   : > { %7066 = shalt.err (!%p7063_p4)
}
  0x94   : > { %s8994_s26 = scalar_lea.sflag [#allocation9], %s7444_s20  ;;  %s6375_s9 = sshll.u32 %s7253_s14, 7 }
  0x95   : > { %6768 = dma.hbm_to_vmem [thread:$0]  (!%p7507_p3), %s411_s25, 4096, %s413_s15, %s8994_s26, %s8985_s3, %s8985_s3, %s8984_s30  }
  0x96   : > { %s447_s11 = scalar_lea.vmem [#allocation13], %s6374_s22  ;;  %s452_s17 = scalar_lea.hbm %s8915_s6, %s6375_s9 }
  0x97   : > { %s454_s19 = sshll.u32 %s447_s11, 4  ;;  %p8995_p13 = pmov %p8993_p6  ;;  %s455_s19 = int_to_ptr.vmem [resolvable:$true] %s454_s19 }
  0x98   : > { %s7080_s23 = scalar_lea.vmem %s455_s19, 128  ;;  %s7267_s21 = smov [#allocation13]  }
  0x99   : > { %p7081_p1 = scmp.ne.s32.totalorder %s455_s19, %s7080_s23  ;;  %s7085_s5 = sshll.u32 %s7267_s21, 4  ;;  %s7086_s5 = int_to_ptr.vmem [resolvable:$false] %s7085_s5 }
  0x9a   : > { %s7087_s8 = scalar_lea.vmem %s7086_s5, 256  ;;  %p7088_p0 = scmp.lt.s32.totalorder %s455_s19, %s7086_s5 }
  0x9b   : > { %p7083_p6 = pnand %p7081_p1, %p8995_p13  ;;  %p7089_p7 = scmp.lt.s32.totalorder %s7087_s8, %s7080_s23 }
  0x9d   : > { %p7084_p11 = pneg %p7083_p6  ;;  %p7090_p10 = por %p7089_p7, %p7088_p0 }
  0x9f   : > { %p7091_p12 = pnand %p7090_p10, %p7084_p11 }
  0xa1   : > { %7094 = shalt.err (!%p7091_p12)
}
  0xa2   : > { %6774 = dma.hbm_to_vmem [thread:$0]  (!%p7507_p3), %s452_s17, 128, %s455_s19, %s423_s1  }
  0xa3   : > { %463 = sbr.rel (%p7470_p2) target bundleno = 1026 (0x402), region = 48  ;;  %s8996_s3 = sld [smem:[#allocation25_spill]] (!%p7470_p2) }
  0xa9   : > { %s7611_s25 = sand.u32 1, %s8996_s3  }
  0xaa   : > { %s7614_s15 = sshll.u32 %s7611_s25, 5  ;;  %s466_s22 = scalar_lea.sflag [#allocation3], %s7611_s25 }
  0xab   : > { %s7618_s24 = scalar_lea.vmem [#allocation2], %s7614_s15 }
  0xac   : > { %7192 = dma.done.wait (%p7404_p8), %s466_s22, 512  }
  0xad   : > { %7194 = vsyncadd (%p7404_p8), %s466_s22, 4294966784  ;;  %s8998_s1 = sld [smem:[#allocation30_spill]]  ;;  %s7626_s18 = scalar_lea.vmem [#allocation5], %s7614_s15 }
  0xb3   : > { %s474_s20 = sand.u32 1, %s8998_s1  }
  0xb4   : > { %s475_s12 = scalar_lea.sflag [#allocation6], %s474_s20 }
  0xb5   : > { %7196 = dma.done.wait (%p7404_p8), %s475_s12, 1024  }
  0xb6   : > { %7198 = vsyncadd (%p7404_p8), %s475_s12, 4294966272  ;;  %s8999_s27 = sld [smem:[#allocation23_spill]]  ;;  %s7636_s9 = scalar_lea.vmem [#allocation7], %s7614_s15 }
  0xb7   : > { %s493_s11 = scalar_lea.sflag [#allocation9], %s474_s20 }
  0xbc   : > { %s494_s7 = sand.u32 1, %s8999_s27  }
  0xbd   : > { %s6380_s13 = sshll.u32 %s494_s7, 8 }
  0xbe   : > { %s7638_s19 = scalar_lea.vmem [#allocation8], %s6380_s13 }
  0xbf   : > { %7200 = dma.done.wait (%p7489_p5), %s493_s11, 8192  }
  0xc0   : > { %7202 = vsyncadd (%p7489_p5), %s493_s11, 4294959104  ;;  %s7644_s28 = scalar_lea.vmem [#allocation10], %s6380_s13  ;;  %s511_s16 = scalar_lea.sflag [#allocation12], %s474_s20 }
  0xc1   : > { %s7646_s17 = scalar_lea.vmem [#allocation11], %s6380_s13 }
  0xc2   : > { %7204 = dma.done.wait (%p7489_p5), %s511_s16, 4224  }
  0xc3   : > { %7206 = vsyncadd (%p7489_p5), %s511_s16, 4294963072  ;;  %v611_v0 = vlaneseq  ;;  %v7268_v1 = vmov 0.0   ;;  %v7269_v2 = vmov 1966171168   ;;  %vm7270_vm0 = vmmov 0   ;;  %v7663_v9 = vld [vmem:[%s7626_s18] sm:$0xff] }
  0xc4   : > { %6495 = vmatprep.subr.mxu0 %v7268_v1  ;;  %v609_v3 = vunpack.c.l.s4 %v7269_v2  ;;  %6500 = vmatprep.subr.mxu1 %v7268_v1  ;;  %vm1027_vm1 = vcmask 64512   ;;  %v3129_v10 = vld [vmem:[%s7644_s28] sm:$0xff]  ;;  %v3130_v11 = vld [vmem:[%s7644_s28 + $0x8] sm:$0xff]  ;;  %v805_v42 = vld [vmem:[%s7638_s19 + $0x10] sm:$0xff]  ;;  %vm1166_vm2 = vcmask 1041409   ;;  %vm1168_vm3 = vcmask 1042434  }
  0xc5   : > { %v612_v4 = vshrl.u32 %v611_v0, 7  ;;  %v1133_v5 = vand.u32 127, %v611_v0  ;;  %6497 = vmatprep.mubr.msk.f32.mxu0 %vm7270_vm0, %v7268_v1  ;;  %6502 = vmatprep.mubr.msk.f32.mxu1 %vm7270_vm0, %v7268_v1  ;;  %v3161_v12 = vmul.f32 %v3129_v10, %v7663_v9  ;;  %v3162_v13 = vmul.f32 %v3130_v11, %v7663_v9  ;;  %v591_v15 = vld [vmem:[%s7618_s24] sm:$0xff]  ;;  %v7679_v20 = vld [vmem:[%s7618_s24 + $0x8] sm:$0xff]  ;;  %v806_v2 = vld [vmem:[%s7638_s19 + $0x18] sm:$0xff]  ;;  %s6383_s23 = sshll.u32 %s494_s7, 3 }
  0xc6   : > { %v610_v6 = vunpack.c.0.s8 %v609_v3  ;;  %v1184_v14 = vsel %vm1027_vm1, %v7663_v9, 0  ;;  %v1181_v19 = vsel %vm1027_vm1, %v591_v15, 0  ;;  %v607_v21 = vcombine.high %v591_v15, %v591_v15  ;;  %v7694_v30 = vld [vmem:[%s7626_s18 + $0x8] sm:$0xff]  ;;  %v803_v31 = vld [vmem:[%s7638_s19] sm:$0xff]  ;;  %s523_s21 = scalar_lea.vmem [#allocation13], %s6383_s23  ;;  %s8384_s5 = scalar_lea.vmem [#allocation15], %s7614_s15 }
  0xc7   : > { %v7658_v7 = vsub.s32 %v1133_v5, %v612_v4  ;;  %v7672_v16 = vsub.s32 0, %v612_v4  ;;  %v7674_v17 = vand.u32 4294901760, %v1184_v14  ;;  %v3193_v22 = vsel %vm1027_vm1, %v3161_v12, 0.0  ;;  %v811_v39 = vld [vmem:[%s7638_s19 + $0x40] sm:$0xff]  ;;  %v812_v49 = vld [vmem:[%s7638_s19 + $0x48] sm:$0xff]  ;;  %v7749_v12 = vld [vmem:[%s7626_s18 + $0x10] sm:$0xff] }
  0xc8   : > { %v7660_v8 = vsub.s32 %v610_v6, %v612_v4  ;;  %v3196_v23 = vsel %vm1027_vm1, %v3162_v13, 0.0  ;;  %v7683_v24 = vand.u32 4294901760, %v1181_v19  ;;  %3194 = vadd.xlane.f32.xlu0 %v3193_v22  ;;  %v1680_v28 = vsel %vm1027_vm1, %v7679_v20, 0  ;;  %v804_v50 = vld [vmem:[%s7638_s19 + $0x8] sm:$0xff]  ;;  %s9001_s8 = sld [smem:[#allocation26_spill]]  ;;  %s6089_s13 = sshll.u32 %s8384_s5, 4  ;;  %s8696_s13 = int_to_ptr.vmem [resolvable:$true] %s6089_s13 }
  0xc9   : > { %3197 = vadd.xlane.f32.xlu1 %v3196_v23  ;;  %v7689_v27 = vsub.f32 %v1184_v14, %v7674_v17  ;;  %6496 = vmatpush3.xpose.msra.mxu0 %v7674_v17  ;;  %v7704_v34 = vand.u32 4294901760, %v1680_v28  ;;  %v1683_v45 = vsel %vm1027_vm1, %v7694_v30, 0  ;;  %vm1170_vm4 = vcmask 1043459   ;;  %s9002_s3 = sld [smem:[#allocation27_spill]]  ;;  %s7095_s11 = scalar_lea.vmem %s8696_s13, 512 }
  0xca   : > { %v614_v18 = vrot.slane %v591_v15, %v7660_v8  ;;  %v663_v25 = vrot.slane %v7679_v20, %v7660_v8  ;;  %v7699_v32 = vsub.f32 %v1181_v19, %v7683_v24  ;;  %6505 = vmatprep.subr.mxu0 %v7268_v1  ;;  %v7735_v3 = vand.u32 4294901760, %v1683_v45  ;;  %s9004_s27 = sld [smem:[#allocation43_spill]]  ;;  %p7096_p8 = scmp.ne.s32.totalorder %s8696_s13, %s7095_s11 }
  0xcb   : > { %v1295_v37 = vand.u32 4294901760, %v7689_v27  ;;  %v621_v4 = vrot.slane %v607_v21, %v7660_v8  ;;  %v7739_v5 = vsub.f32 %v1680_v28, %v7704_v34  ;;  %v7757_v21 = vld [vmem:[%s7618_s24 + $0x10] sm:$0xff]  ;;  %v2182_v28 = vsel %vm1027_vm1, %v7749_v12, 0 }
  0xcc   : > { %v630_v26 = vrot.slane %v614_v18, %v7660_v8  ;;  %v622_v29 = vcombine.high %v614_v18, %v614_v18  ;;  %v7702_v33 = vrot.slane %v663_v25, %v7660_v8  ;;  %v671_v35 = vcombine.high %v663_v25, %v663_v25  ;;  %v807_v18 = vld [vmem:[%s7638_s19 + $0x20] sm:$0xff]  ;;  %p7097_p5 = pnand %p7096_p8, %p7408_p9 }
  0xcd   : > { %v1254_v41 = vand.u32 4294901760, %v7699_v32  ;;  %v1296_v47 = vsub.f32 %v7689_v27, %v1295_v37  ;;  %v7745_v6 = vsub.f32 %v1683_v45, %v7735_v3  ;;  %v637_v10 = vrot.slane %v621_v4, %v7660_v8 }
  0xce   : > { %v838_v36 = vrot.slane %v630_v26, %v7672_v16  ;;  %v652_v38 = vcombine.high %v630_v26, %v630_v26  ;;  %v644_v40 = vrot.slane %v622_v29, %v7660_v8  ;;  %v870_v43 = vrot.slane %v7702_v33, %v7672_v16  ;;  %s6388_s22 = sshll.u32 %s9001_s8, 2  ;;  %p7098_p2 = pneg %p7097_p5 }
  0xcf   : > { %v7716_v44 = vrot.slane %v671_v35, %v7660_v8  ;;  %v1255_v52 = vsub.f32 %v7699_v32, %v1254_v41  ;;  %v1297_v57 = vand.u32 4294901760, %v1296_v47  ;;  %v623_v11 = vcombine.high %v621_v4, %v621_v4  ;;  %v808_v35 = vld [vmem:[%s7638_s19 + $0x28] sm:$0xff] }
  0xd0   : > { %v995_v46 = vmul.f32 %v838_v36, %v803_v31  ;;  %v846_v48 = vrot.slane %v652_v38, %v7672_v16  ;;  %v842_v51 = vrot.slane %v644_v40, %v7672_v16  ;;  %v1003_v53 = vmul.f32 %v870_v43, %v811_v39  ;;  %s9005_s26 = smov %s9004_s27 }
  0xd1   : > { %v874_v54 = vrot.slane %v7716_v44, %v7672_v16  ;;  %v654_v55 = vcombine.high %v644_v40, %v644_v40  ;;  %v1256_v59 = vand.u32 4294901760, %v1255_v52  ;;  %6501 = vmatpush3.xpose.msra.mxu1 %v1297_v57  ;;  %v1753_v19 = vand.u32 4294901760, %v7739_v5 }
  0xd2   : > { %v1028_v56 = vsel %vm1027_vm1, %v995_v46, 0.0  ;;  %v997_v58 = vmul.f32 %v846_v48, %v805_v42  ;;  %v996_v61 = vmul.f32 %v842_v51, %v804_v50  ;;  %v1052_v0 = vsel %vm1027_vm1, %v1003_v53, 0.0  ;;  %6510 = vmatprep.subr.mxu1 %v7268_v1  ;;  %v810_v51 = vld [vmem:[%s7638_s19 + $0x38] sm:$0xff] }
  0xd3   : > { %1029 = vadd.xlane.f32.xlu0 %v1028_v56  ;;  %v1004_v60 = vmul.f32 %v874_v54, %v812_v49  ;;  %v850_v62 = vrot.slane %v654_v55, %v7672_v16  ;;  %6498 = vmatmul.mubr.f32.vlgmr.msra.gmra.mxu0 %v1256_v59  ;;  %v854_v22 = vrot.slane %v637_v10, %v7672_v16  ;;  %v1794_v23 = vand.u32 4294901760, %v7745_v6 }
  0xd4   : > { %v1034_v63 = vsel %vm1027_vm1, %v997_v58, 0.0  ;;  %6506 = vmatpush3.xpose.msra.mxu0 %v7689_v27  ;;  %6507 = vmatprep.mubr.msk.f32.mxu0 %vm7270_vm0, %v7268_v1  ;;  %v1031_v14 = vsel %vm1027_vm1, %v996_v61, 0.0  ;;  %v651_v25 = vrot.slane %v623_v11, %v7660_v8  ;;  %v653_v26 = vcombine.high %v637_v10, %v637_v10  ;;  %v3131_v58 = vld [vmem:[%s7644_s28 + $0x10] sm:$0xff]  ;;  %v7841_v11 = vld [vmem:[%s7626_s18 + $0x18] sm:$0xff] }
  0xd5   : > { %1035 = vadd.xlane.f32.xlu1 %v1034_v63  ;;  %6503 = vmatmul.mubr.f32.vlgmr.msra.gmra.mxu1 %v7683_v24  ;;  %v1055_v13 = vsel %vm1027_vm1, %v1004_v60, 0.0  ;;  %v998_v15 = vmul.f32 %v850_v62, %v806_v2  ;;  %v701_v27 = vcombine.high %v7702_v33, %v7702_v33  ;;  %v999_v29 = vmul.f32 %v854_v22, %v807_v18  ;;  %v814_v60 = vld [vmem:[%s7638_s19 + $0x58] sm:$0xff] }
  0xd6   : > { %6515 = vmatprep.subr.mxu0 %v7268_v1  ;;  %6511 = vmatpush3.xpose.msra.mxu1 %v7674_v17  ;;  %v1754_v31 = vsub.f32 %v7739_v5, %v1753_v19  ;;  %v858_v36 = vrot.slane %v651_v25, %v7672_v16  ;;  %v2179_v38 = vsel %vm1027_vm1, %v7757_v21, 0  ;;  %v1795_v33 = vsub.f32 %v7745_v6, %v1794_v23 }
  0xd7   : > { %1053 = vadd.xlane.f32.xlu0 %v1052_v0  ;;  %6508 = vmatmul.mubr.f32.vlgmr.msra.gmra.mxu0 %v7699_v32  ;;  %v862_v39 = vrot.slane %v653_v26, %v7672_v16  ;;  %v655_v40 = vcombine.high %v651_v25, %v651_v25  ;;  %v1037_v42 = vsel %vm1027_vm1, %v998_v15, 0.0  ;;  %v1040_v43 = vsel %vm1027_vm1, %v999_v29, 0.0  ;;  %v7847_v15 = vld [vmem:[%s7618_s24 + $0x18] sm:$0xff]  ;;  %v815_v26 = vld [vmem:[%s7638_s19 + $0x60] sm:$0xff]  ;;  %s6389_s24 = sshll.u32 %s9002_s3, 3 }
  0xd8   : > { %6516 = vmatpush3.xpose.msra.mxu0 %v1295_v37  ;;  %6512 = vmatprep.mubr.msk.f32.mxu1 %vm7270_vm0, %v7268_v1  ;;  %v809_v37 = vld [vmem:[%s7638_s19 + $0x30] sm:$0xff]  ;;  %v1000_v45 = vmul.f32 %v858_v36, %v808_v35  ;;  %v7792_v46 = vand.u32 4294901760, %v2182_v28  ;;  %v7794_v47 = vand.u32 4294901760, %v2179_v38  ;;  %v1755_v32 = vand.u32 4294901760, %v1754_v31  ;;  %v3133_v35 = vld [vmem:[%s7644_s28 + $0x20] sm:$0xff]  ;;  %s8685_s1 = sadd.s32 %s6389_s24, %s6388_s22 }
  0xd9   : > { %1056 = vadd.xlane.f32.xlu1 %v1055_v13  ;;  %6513 = vmatmul.mubr.f32.vlgmr.msra.gmra.mxu1 %v1254_v41  ;;  %v1001_v41 = vmul.f32 %v862_v39, %v809_v37  ;;  %v866_v48 = vrot.slane %v655_v40, %v7672_v16  ;;  %v656_v49 = vcombine.high %v7679_v20, %v7679_v20  ;;  %v1796_v50 = vand.u32 4294901760, %v1795_v33  ;;  %v816_v40 = vld [vmem:[%s7638_s19 + $0x68] sm:$0xff]  ;;  %s6390_s20 = sshll.u32 %s8685_s1, 7 }
  0xda   : > { %6517 = vmatprep.mubr.msk.f32.mxu0 %vm7270_vm0, %v7268_v1  ;;  %6520 = vmatprep.subr.mxu1 %v7268_v1  ;;  %v878_v52 = vrot.slane %v701_v27, %v7672_v16  ;;  %v703_v53 = vcombine.high %v7716_v44, %v7716_v44  ;;  %v1043_v20 = vsel %vm1027_vm1, %v1000_v45, 0.0  ;;  %v7814_v54 = vsub.f32 %v2179_v38, %v7794_v47  ;;  %s8693_s7 = scalar_lea.hbm %s9004_s27, %s6390_s20 }
  0xdb   : > { %1032 = vadd.xlane.f32.xlu0 %v1031_v14  ;;  %6518 = vmatmul.mubr.f32.vlgmr.msra.gmra.mxu0 %v7683_v24  ;;  %v670_v55 = vrot.slane %v656_v49, %v7660_v8  ;;  %v1046_v56 = vsel %vm1027_vm1, %v1001_v41, 0.0  ;;  %v1002_v44 = vmul.f32 %v866_v48, %v810_v51  ;;  %v7820_v57 = vsub.f32 %v2182_v28, %v7792_v46  ;;  %v3132_v14 = vld [vmem:[%s7644_s28 + $0x18] sm:$0xff]  ;;  %v3134_v48 = vld [vmem:[%s7644_s28 + $0x28] sm:$0xff]  ;;  %v817_v51 = vld [vmem:[%s7638_s19 + $0x70] sm:$0xff] }
  0xdc   : > { %6521 = vmatpush3.xpose.msra.mxu1 %v7674_v17  ;;  %6525 = vmatprep.subr.mxu0 %v7268_v1  ;;  %v813_v17 = vld [vmem:[%s7638_s19 + $0x50] sm:$0xff]  ;;  %v882_v59 = vrot.slane %v703_v53, %v7672_v16  ;;  %v2252_v61 = vand.u32 4294901760, %v7814_v54  ;;  %v3163_v10 = vmul.f32 %v3131_v58, %v7663_v9  ;;  %v3164_v28 = vmul.f32 %v3132_v14, %v7663_v9  ;;  %v3136_v14 = vld [vmem:[%s7644_s28 + $0x38] sm:$0xff] }
  0xdd   : > { %1038 = vadd.xlane.f32.xlu1 %v1037_v42  ;;  %6526 = vmatpush3.xpose.msra.mxu0 %v7735_v3  ;;  %v686_v62 = vrot.slane %v670_v55, %v7660_v8  ;;  %v1049_v63 = vsel %vm1027_vm1, %v1002_v44, 0.0  ;;  %v2293_v0 = vand.u32 4294901760, %v7820_v57  ;;  %v672_v2 = vcombine.high %v670_v55, %v670_v55  ;;  %v3135_v53 = vld [vmem:[%s7644_s28 + $0x30] sm:$0xff] }
  0xde   : > { %6522 = vmatprep.mubr.msk.f32.mxu1 %vm7270_vm0, %v7268_v1  ;;  %6527 = vmatprep.mubr.msk.f32.mxu0 %vm7270_vm0, %v7268_v1  ;;  %v1006_v13 = vmul.f32 %v882_v59, %v814_v60  ;;  %v2253_v18 = vsub.f32 %v7814_v54, %v2252_v61  ;;  %v2678_v29 = vsel %vm1027_vm1, %v7847_v15, 0  ;;  %v3165_v42 = vmul.f32 %v3133_v35, %v7663_v9  ;;  %v818_v60 = vld [vmem:[%s7638_s19 + $0x78] sm:$0xff]  ;;  %v821_v35 = vld [vmem:[%s7638_s19 + $0x90] sm:$0xff] }
  0xdf   : > { %1041 = vadd.xlane.f32.xlu0 %v1040_v43  ;;  %6523 = vmatmul.mubr.f32.vlgmr.msra.gmra.mxu1 %v7683_v24  ;;  %v1005_v24 = vmul.f32 %v878_v52, %v813_v17  ;;  %v886_v22 = vrot.slane %v686_v62, %v7672_v16  ;;  %v2294_v25 = vsub.f32 %v7820_v57, %v2293_v0  ;;  %v7882_v39 = vand.u32 4294901760, %v2678_v29 }
  0xe0   : > { %6530 = vmatprep.subr.mxu1 %v7268_v1  ;;  %6528 = vmatmul.mubr.f32.vlgmr.msra.gmra.mxu0 %v1755_v32  ;;  %v700_v27 = vrot.slane %v672_v2, %v7660_v8  ;;  %v1061_v31 = vsel %vm1027_vm1, %v1006_v13, 0.0  ;;  %v702_v36 = vcombine.high %v686_v62, %v686_v62  ;;  %v712_v32 = vrot.slane %v7757_v21, %v7660_v8 }
  0xe1   : > { %6531 = vmatpush3.xpose.msra.mxu1 %v1796_v50  ;;  %6535 = vmatprep.subr.mxu0 %v7268_v1  ;;  %v1058_v4 = vsel %vm1027_vm1, %v1005_v24, 0.0  ;;  %v2295_v33 = vand.u32 4294901760, %v2294_v25  ;;  %v7902_v50 = vsub.f32 %v2678_v29, %v7882_v39  ;;  %v3205_v52 = vsel %vm1027_vm1, %v3165_v42, 0.0  ;;  %v3137_v29 = vld [vmem:[%s7644_s28 + $0x40] sm:$0xff] }
  0xe2   : > { %1044 = vadd.xlane.f32.xlu1 %v1043_v20  ;;  %6536 = vmatpush3.xpose.msra.mxu0 %v7745_v6  ;;  %v2681_v6 = vsel %vm1027_vm1, %v7841_v11, 0  ;;  %v890_v37 = vrot.slane %v700_v27, %v7672_v16  ;;  %v894_v45 = vrot.slane %v702_v36, %v7672_v16  ;;  %v704_v49 = vcombine.high %v700_v27, %v700_v27 }
  0xe3   : > { %6532 = vmatprep.mubr.msk.f32.mxu1 %vm7270_vm0, %v7268_v1  ;;  %1047 = vadd.xlane.f32.xlu0 %v1046_v56  ;;  %v7878_v38 = vand.u32 4294901760, %v2681_v6  ;;  %v3166_v17 = vmul.f32 %v3134_v48, %v7663_v9  ;;  %v728_v20 = vrot.slane %v712_v32, %v7660_v8  ;;  %v720_v55 = vcombine.high %v712_v32, %v712_v32  ;;  %v822_v48 = vld [vmem:[%s7638_s19 + $0x98] sm:$0xff] }
  0xe4   : > { %6533 = vmatmul.mubr.f32.vlgmr.msra.gmra.mxu1 %v7704_v34  ;;  %6537 = vmatprep.mubr.msk.f32.mxu0 %vm7270_vm0, %v7268_v1  ;;  %v1009_v24 = vmul.f32 %v894_v45, %v817_v51  ;;  %v898_v58 = vrot.slane %v704_v49, %v7672_v16  ;;  %v2751_v59 = vand.u32 4294901760, %v7902_v50  ;;  %v3167_v62 = vmul.f32 %v3135_v53, %v7663_v9  ;;  %v3140_v53 = vld [vmem:[%s7644_s28 + $0x58] sm:$0xff] }
  0xe5   : > { %6540 = vmatprep.subr.mxu1 %v7268_v1  ;;  %6538 = vmatmul.mubr.f32.vlgmr.msra.gmra.mxu0 %v7739_v5  ;;  %v2254_v5 = vand.u32 4294901760, %v2253_v18  ;;  %v7898_v41 = vsub.f32 %v2681_v6, %v7878_v38  ;;  %v742_v2 = vrot.slane %v720_v55, %v7660_v8  ;;  %v3168_v18 = vmul.f32 %v3136_v14, %v7663_v9  ;;  %v820_v6 = vld [vmem:[%s7638_s19 + $0x88] sm:$0xff] }
  0xe6   : > { %6541 = vmatpush3.xpose.msra.mxu1 %v7735_v3  ;;  %6545 = vmatprep.subr.mxu0 %v7268_v1  ;;  %v1010_v13 = vmul.f32 %v898_v58, %v818_v60  ;;  %v3141_v58 = vld [vmem:[%s7644_s28 + $0x60] sm:$0xff]  ;;  %v824_v60 = vld [vmem:[%s7638_s19 + $0xa8] sm:$0xff]  ;;  %vm1172_vm5 = vcmask 1044484   ;;  %vm1174_vm6 = vcmask 1045509   ;;  %vm1176_vm7 = vcmask 1046534  }
  0xe7   : > { %1050 = vadd.xlane.f32.xlu1 %v1049_v63  ;;  %6546 = vmatpush3.xpose.msra.mxu0 %v1794_v23  ;;  %v3199_v23 = vsel %vm1027_vm1, %v3163_v10, 0.0  ;;  %v2792_v56 = vand.u32 4294901760, %v7898_v41  ;;  %v3208_v63 = vsel %vm1027_vm1, %v3166_v17, 0.0  ;;  %v1070_v10 = vsel %vm1027_vm1, %v1009_v24, 0.0 }
  0xe8   : > { %6542 = vmatprep.mubr.msk.f32.mxu1 %vm7270_vm0, %v7268_v1  ;;  %1059 = vadd.xlane.f32.xlu0 %v1058_v4  ;;  %v3214_v9 = vsel %vm1027_vm1, %v3168_v18, 0.0  ;;  %v752_v36 = vcombine.high %v742_v2, %v742_v2  ;;  %vm1178_vm8 = vcmask 1047559  }
  0xe9   : > { %6543 = vmatmul.mubr.f32.vlgmr.msra.gmra.mxu1 %v1753_v19  ;;  %6547 = vmatprep.mubr.msk.f32.mxu0 %vm7270_vm0, %v7268_v1  ;;  %v1007_v19 = vmul.f32 %v886_v22, %v815_v26  ;;  %v2793_v4 = vsub.f32 %v7898_v41, %v2792_v56  ;;  %v906_v22 = vrot.slane %v742_v2, %v7672_v16 }
  0xea   : > { %6550 = vmatprep.subr.mxu1 %v7268_v1  ;;  %6548 = vmatmul.mubr.f32.vlgmr.msra.gmra.mxu0 %v7704_v34  ;;  %v750_v26 = vcombine.high %v728_v20, %v728_v20  ;;  %v914_v45 = vrot.slane %v752_v36, %v7672_v16 }
  0xeb   : > { %6551 = vmatpush3.xpose.msra.mxu1 %v7735_v3  ;;  %6555 = vmatprep.subr.mxu0 %v7268_v1  ;;  %v3202_v3 = vsel %vm1027_vm1, %v3164_v28, 0.0  ;;  %v1064_v43 = vsel %vm1027_vm1, %v1007_v19, 0.0  ;;  %v2794_v25 = vand.u32 4294901760, %v2793_v4  ;;  %v705_v28 = vcombine.high %v7757_v21, %v7757_v21  ;;  %v3138_v19 = vld [vmem:[%s7644_s28 + $0x48] sm:$0xff] }
  0xec   : > { %3200 = vadd.xlane.f32.xlu1 %v3199_v23  ;;  %6556 = vmatpush3.xpose.msra.mxu0 %v7792_v46  ;;  %v3169_v21 = vmul.f32 %v3137_v29, %v7694_v30  ;;  %v1014_v17 = vmul.f32 %v914_v45, %v822_v48 }
  0xed   : > { %6552 = vmatprep.mubr.msk.f32.mxu1 %vm7270_vm0, %v7268_v1  ;;  %1062 = vadd.xlane.f32.xlu0 %v1061_v31  ;;  %v910_v31 = vrot.slane %v750_v26, %v7672_v16 }
  0xee   : > { %6553 = vmatmul.mubr.f32.vlgmr.msra.gmra.mxu1 %v7704_v34  ;;  %6557 = vmatprep.mubr.msk.f32.mxu0 %vm7270_vm0, %v7268_v1  ;;  %v1008_v34 = vmul.f32 %v890_v37, %v816_v40  ;;  %v3217_v42 = vsel %vm1027_vm1, %v3169_v21, 0.0 }
  0xef   : > { %6560 = vmatprep.subr.mxu1 %v7268_v1  ;;  %6558 = vmatmul.mubr.f32.vlgmr.msra.gmra.mxu0 %v2254_v5  ;;  %v1013_v40 = vmul.f32 %v910_v31, %v821_v35 }
  0xf0   : > { %6561 = vmatpush3.xpose.msra.mxu1 %v2295_v33  ;;  %3203 = vadd.xlane.f32.xlu1 %v3202_v3  ;;  %v1067_v44 = vsel %vm1027_vm1, %v1008_v34, 0.0  ;;  %v719_v33 = vrot.slane %v705_v28, %v7660_v8  ;;  %v3170_v3 = vmul.f32 %v3138_v19, %v7694_v30 }
  0xf1   : > { %6565 = vmatprep.subr.mxu0 %v7268_v1  ;;  %6562 = vmatprep.mubr.msk.f32.mxu1 %vm7270_vm0, %v7268_v1 }
  0xf2   : > { %6566 = vmatpush3.xpose.msra.mxu0 %v7820_v57  ;;  %1065 = vadd.xlane.f32.xlu0 %v1064_v43  ;;  %v902_v57 = vrot.slane %v728_v20, %v7672_v16  ;;  %v3139_v43 = vld [vmem:[%s7644_s28 + $0x50] sm:$0xff]  ;;  %v735_v32 = vrot.slane %v719_v33, %v7660_v8  ;;  %v721_v34 = vcombine.high %v719_v33, %v719_v33  ;;  %v3220_v49 = vsel %vm1027_vm1, %v3170_v3, 0.0  ;;  %v3145_v3 = vld [vmem:[%s7644_s28 + $0x80] sm:$0xff] }
  0xf3   : > { %6563 = vmatmul.mubr.f32.vlgmr.msra.gmra.mxu1 %v7794_v47  ;;  %6570 = vmatprep.subr.mxu1 %v7268_v1  ;;  %v3171_v51 = vmul.f32 %v3139_v43, %v7694_v30 }
  0xf4   : > { %6567 = vmatprep.mubr.msk.f32.mxu0 %vm7270_vm0, %v7268_v1  ;;  %6571 = vmatpush3.xpose.msra.mxu1 %v7792_v46  ;;  %v918_v20 = vrot.slane %v735_v32, %v7672_v16  ;;  %v749_v55 = vrot.slane %v721_v34, %v7660_v8  ;;  %v3146_v34 = vld [vmem:[%s7644_s28 + $0x88] sm:$0xff] }
  0xf5   : > { %3206 = vadd.xlane.f32.xlu1 %v3205_v52  ;;  %6568 = vmatmul.mubr.f32.vlgmr.msra.gmra.mxu0 %v7814_v54  ;;  %v819_v54 = vld [vmem:[%s7638_s19 + $0x80] sm:$0xff]  ;;  %v1082_v52 = vsel %vm1027_vm1, %v1013_v40, 0.0 }
  0xf6   : > { %6575 = vmatprep.subr.mxu0 %v7268_v1  ;;  %6572 = vmatprep.mubr.msk.f32.mxu1 %vm7270_vm0, %v7268_v1  ;;  %v1011_v27 = vmul.f32 %v902_v57, %v819_v54  ;;  %v753_v14 = vcombine.high %v749_v55, %v749_v55  ;;  %v825_v57 = vld [vmem:[%s7638_s19 + $0xb0] sm:$0xff] }
  0xf7   : > { %6576 = vmatpush3.xpose.msra.mxu0 %v2293_v0  ;;  %1068 = vadd.xlane.f32.xlu0 %v1067_v44  ;;  %v2752_v0 = vsub.f32 %v7902_v50, %v2751_v59  ;;  %v1085_v44 = vsel %vm1027_vm1, %v1014_v17, 0.0 }
  0xf8   : > { %6573 = vmatmul.mubr.f32.vlgmr.msra.gmra.mxu1 %v2252_v61  ;;  %6580 = vmatprep.subr.mxu1 %v7268_v1  ;;  %v3211_v61 = vsel %vm1027_vm1, %v3167_v62, 0.0  ;;  %v1076_v5 = vsel %vm1027_vm1, %v1011_v27, 0.0  ;;  %v3173_v62 = vmul.f32 %v3141_v58, %v7694_v30  ;;  %v930_v26 = vrot.slane %v753_v14, %v7672_v16  ;;  %v826_v27 = vld [vmem:[%s7638_s19 + $0xb8] sm:$0xff]  ;;  %v3149_v14 = vld [vmem:[%s7644_s28 + $0xa0] sm:$0xff] }
  0xf9   : > { %6577 = vmatprep.mubr.msk.f32.mxu0 %vm7270_vm0, %v7268_v1  ;;  %6581 = vmatpush3.xpose.msra.mxu1 %v7792_v46  ;;  %v1073_v46 = vsel %vm1027_vm1, %v1010_v13, 0.0  ;;  %v2753_v23 = vand.u32 4294901760, %v2752_v0 }
  0xfa   : > { %3209 = vadd.xlane.f32.xlu1 %v3208_v63  ;;  %6578 = vmatmul.mubr.f32.vlgmr.msra.gmra.mxu0 %v7794_v47  ;;  %v761_v63 = vrot.slane %v7847_v15, %v7660_v8  ;;  %v3229_v0 = vsel %vm1027_vm1, %v3173_v62, 0.0 }
  0xfb   : > { %6582 = vmatprep.mubr.msk.f32.mxu1 %vm7270_vm0, %v7268_v1  ;;  %1071 = vadd.xlane.f32.xlu0 %v1070_v10  ;;  %v3142_v10 = vld [vmem:[%s7644_s28 + $0x68] sm:$0xff] }
  0xfc   : > { %6583 = vmatmul.mubr.f32.vlgmr.msra.gmra.mxu1 %v7794_v47  ;;  %6585 = vmatprep.subr.mxu0 %v7268_v1  ;;  %v1012_v47 = vmul.f32 %v906_v22, %v820_v6  ;;  %v3174_v54 = vmul.f32 %v3142_v10, %v7694_v30 }
  0xfd   : > { %6586 = vmatpush3.xpose.msra.mxu0 %v7878_v38  ;;  %6590 = vmatprep.subr.mxu1 %v7268_v1 }
  0xfe   : > { %3212 = vadd.xlane.f32.xlu1 %v3211_v61  ;;  %6587 = vmatprep.mubr.msk.f32.mxu0 %vm7270_vm0, %v7268_v1  ;;  %v1079_v37 = vsel %vm1027_vm1, %v1012_v47, 0.0  ;;  %v769_v61 = vcombine.high %v761_v63, %v761_v63  ;;  %v3232_v6 = vsel %vm1027_vm1, %v3174_v54, 0.0  ;;  %v3144_v47 = vld [vmem:[%s7644_s28 + $0x78] sm:$0xff]  ;;  %v832_v54 = vld [vmem:[%s7638_s19 + $0xe8] sm:$0xff] }
  0xff   : > { %1074 = vadd.xlane.f32.xlu0 %v1073_v46  ;;  %6591 = vmatpush3.xpose.msra.mxu1 %v2794_v25  ;;  %v3143_v25 = vld [vmem:[%s7644_s28 + $0x70] sm:$0xff]  ;;  %v777_v46 = vrot.slane %v761_v63, %v7660_v8  ;;  %v3176_v19 = vmul.f32 %v3144_v47, %v7694_v30  ;;  %v831_v63 = vld [vmem:[%s7638_s19 + $0xe0] sm:$0xff] }
 0x100   : > { %6588 = vmatmul.mubr.f32.vlgmr.msra.gmra.mxu0 %v2753_v23  ;;  %6595 = vmatprep.subr.mxu0 %v7268_v1  ;;  %v3175_v23 = vmul.f32 %v3143_v25, %v7694_v30  ;;  %v791_v28 = vrot.slane %v769_v61, %v7660_v8  ;;  %v3151_v47 = vld [vmem:[%s7644_s28 + $0xb0] sm:$0xff] }
 0x101   : > { %6592 = vmatprep.mubr.msk.f32.mxu1 %vm7270_vm0, %v7268_v1  ;;  %6596 = vmatpush3.xpose.msra.mxu0 %v7898_v41  ;;  %v823_v41 = vld [vmem:[%s7638_s19 + $0xa0] sm:$0xff]  ;;  %v934_v31 = vrot.slane %v777_v46, %v7672_v16  ;;  %v799_v40 = vcombine.high %v777_v46, %v777_v46  ;;  %v3238_v43 = vsel %vm1027_vm1, %v3176_v19, 0.0  ;;  %v3183_v19 = vmul.f32 %v3151_v47, %v7749_v12 }
 0x102   : > { %3215 = vadd.xlane.f32.xlu1 %v3214_v9  ;;  %6593 = vmatmul.mubr.f32.vlgmr.msra.gmra.mxu1 %v7882_v39  ;;  %v1015_v24 = vmul.f32 %v918_v20, %v823_v41  ;;  %v1018_v9 = vmul.f32 %v930_v26, %v826_v27  ;;  %v3235_v21 = vsel %vm1027_vm1, %v3175_v23, 0.0  ;;  %v938_v35 = vrot.slane %v791_v28, %v7672_v16  ;;  %v3150_v26 = vld [vmem:[%s7644_s28 + $0xa8] sm:$0xff] }
 0x103   : > { %1077 = vadd.xlane.f32.xlu0 %v1076_v5  ;;  %6600 = vmatprep.subr.mxu1 %v7268_v1  ;;  %v827_v5 = vld [vmem:[%s7638_s19 + $0xc0] sm:$0xff]  ;;  %v942_v48 = vrot.slane %v799_v40, %v7672_v16 }
 0x104   : > { %6597 = vmatprep.mubr.msk.f32.mxu0 %vm7270_vm0, %v7268_v1  ;;  %6601 = vmatpush3.xpose.msra.mxu1 %v7878_v38  ;;  %v1088_v2 = vsel %vm1027_vm1, %v1015_v24, 0.0  ;;  %v1097_v36 = vsel %vm1027_vm1, %v1018_v9, 0.0  ;;  %v1019_v33 = vmul.f32 %v934_v31, %v827_v5  ;;  %v834_v5 = vld [vmem:[%s7638_s19 + $0xf8] sm:$0xff] }
 0x105   : > { %6598 = vmatmul.mubr.f32.vlgmr.msra.gmra.mxu0 %v7902_v50  ;;  %6605 = vmatprep.subr.mxu0 %v7268_v1  ;;  %v3223_v50 = vsel %vm1027_vm1, %v3171_v51, 0.0 }
 0x106   : > { %1080 = vadd.xlane.f32.xlu1 %v1079_v37  ;;  %6602 = vmatprep.mubr.msk.f32.mxu1 %vm7270_vm0, %v7268_v1  ;;  %v828_v37 = vld [vmem:[%s7638_s19 + $0xc8] sm:$0xff] }
 0x107   : > { %3218 = vadd.xlane.f32.xlu0 %v3217_v42  ;;  %6606 = vmatpush3.xpose.msra.mxu0 %v2792_v56  ;;  %v3172_v56 = vmul.f32 %v3140_v53, %v7694_v30  ;;  %v754_v42 = vcombine.high %v7847_v15, %v7847_v15  ;;  %v1020_v45 = vmul.f32 %v938_v35, %v828_v37  ;;  %v3153_v37 = vld [vmem:[%s7644_s28 + $0xc0] sm:$0xff] }
 0x108   : > { %6603 = vmatmul.mubr.f32.vlgmr.msra.gmra.mxu1 %v2751_v59  ;;  %6610 = vmatprep.subr.mxu1 %v7268_v1  ;;  %v751_v59 = vcombine.high %v735_v32, %v735_v32  ;;  %v3177_v30 = vmul.f32 %v3145_v3, %v7749_v12  ;;  %v1100_v32 = vsel %vm1027_vm1, %v1019_v33, 0.0  ;;  %v3178_v53 = vmul.f32 %v3146_v34, %v7749_v12  ;;  %v3152_v33 = vld [vmem:[%s7644_s28 + $0xb8] sm:$0xff] }
 0x109   : > { %6607 = vmatprep.mubr.msk.f32.mxu0 %vm7270_vm0, %v7268_v1  ;;  %6611 = vmatpush3.xpose.msra.mxu1 %v7878_v38  ;;  %v922_v38 = vrot.slane %v749_v55, %v7672_v16  ;;  %v768_v51 = vrot.slane %v754_v42, %v7660_v8  ;;  %v1103_v15 = vsel %vm1027_vm1, %v1020_v45, 0.0  ;;  %v3147_v55 = vld [vmem:[%s7644_s28 + $0x90] sm:$0xff]  ;;  %v3259_v3 = vsel %vm1027_vm1, %v3183_v19, 0.0  ;;  %v3154_v45 = vld [vmem:[%s7644_s28 + $0xc8] sm:$0xff] }
 0x10a   : > { %3221 = vadd.xlane.f32.xlu1 %v3220_v49  ;;  %6608 = vmatmul.mubr.f32.vlgmr.msra.gmra.mxu0 %v7882_v39  ;;  %v926_v13 = vrot.slane %v751_v59, %v7672_v16  ;;  %v801_v49 = vcombine.high %v791_v28, %v791_v28  ;;  %v3241_v17 = vsel %vm1027_vm1, %v3177_v30, 0.0  ;;  %v3244_v24 = vsel %vm1027_vm1, %v3178_v53, 0.0  ;;  %v3155_v30 = vld [vmem:[%s7644_s28 + $0xd0] sm:$0xff] }
 0x10b   : > { %1083 = vadd.xlane.f32.xlu0 %v1082_v52  ;;  %6612 = vmatprep.mubr.msk.f32.mxu1 %vm7270_vm0, %v7268_v1  ;;  %v1016_v4 = vmul.f32 %v922_v38, %v824_v60  ;;  %v829_v52 = vld [vmem:[%s7638_s19 + $0xd0] sm:$0xff]  ;;  %v3179_v58 = vmul.f32 %v3147_v55, %v7749_v12  ;;  %v3148_v60 = vld [vmem:[%s7644_s28 + $0x98] sm:$0xff]  ;;  %v3182_v28 = vmul.f32 %v3150_v26, %v7749_v12 }
 0x10c   : > { %6613 = vmatmul.mubr.f32.vlgmr.msra.gmra.mxu1 %v7882_v39  ;;  %6620 = vmatprep.subr.mxu1 %v7268_v1  ;;  %v3226_v39 = vsel %vm1027_vm1, %v3172_v56, 0.0  ;;  %v1017_v22 = vmul.f32 %v926_v13, %v825_v57  ;;  %v1021_v20 = vmul.f32 %v942_v48, %v829_v52  ;;  %v946_v41 = vrot.slane %v801_v49, %v7672_v16  ;;  %v3159_v55 = vld [vmem:[%s7644_s28 + $0xf0] sm:$0xff] }
 0x10d   : > { %6622 = vmatprep.mubr.msk.f32.mxu1 %vm7270_vm0, %v7268_v1  ;;  %6615 = vmatprep.subr.mxu0 %v7268_v1  ;;  %v1091_v18 = vsel %vm1027_vm1, %v1016_v4, 0.0  ;;  %v770_v56 = vcombine.high %v768_v51, %v768_v51  ;;  %v3180_v4 = vmul.f32 %v3148_v60, %v7749_v12  ;;  %v3184_v40 = vmul.f32 %v3152_v33, %v7749_v12 }
 0x10e   : > { %3224 = vadd.xlane.f32.xlu1 %v3223_v50  ;;  %6617 = vmatprep.mubr.msk.f32.mxu0 %vm7270_vm0, %v7268_v1  ;;  %v1094_v29 = vsel %vm1027_vm1, %v1017_v22, 0.0  ;;  %v784_v50 = vrot.slane %v768_v51, %v7660_v8  ;;  %v1106_v38 = vsel %vm1027_vm1, %v1021_v20, 0.0  ;;  %v3186_v34 = vmul.f32 %v3154_v45, %v7841_v11  ;;  %v3156_v51 = vld [vmem:[%s7644_s28 + $0xd8] sm:$0xff]  ;;  %v3158_v20 = vld [vmem:[%s7644_s28 + $0xe8] sm:$0xff] }
 0x10f   : > { %1086 = vadd.xlane.f32.xlu0 %v1085_v44  ;;  %v830_v44 = vld [vmem:[%s7638_s19 + $0xd8] sm:$0xff]  ;;  %v798_v62 = vrot.slane %v770_v56, %v7660_v8  ;;  %v3250_v61 = vsel %vm1027_vm1, %v3180_v4, 0.0  ;;  %v3187_v49 = vmul.f32 %v3155_v30, %v7841_v11 }
 0x110   : > { %v1022_v59 = vmul.f32 %v946_v41, %v830_v44  ;;  %v3268_v52 = vsel %vm1027_vm1, %v3186_v34, 0.0  ;;  %v3191_v44 = vmul.f32 %v3159_v55, %v7841_v11 }
 0x111   : > { %v954_v57 = vrot.slane %v798_v62, %v7672_v16  ;;  %v802_v27 = vcombine.high %v798_v62, %v798_v62 }
 0x112   : > { %3227 = vadd.xlane.f32.xlu1 %v3226_v39  ;;  %v950_v39 = vrot.slane %v784_v50, %v7672_v16  ;;  %v1109_v10 = vsel %vm1027_vm1, %v1022_v59, 0.0  ;;  %v3283_v59 = vsel %vm1027_vm1, %v3191_v44, 0.0 }
 0x113   : > { %1089 = vadd.xlane.f32.xlu0 %v1088_v2  ;;  %v3247_v2 = vsel %vm1027_vm1, %v3179_v58, 0.0  ;;  %v1024_v25 = vmul.f32 %v954_v57, %v832_v54  ;;  %v962_v31 = vrot.slane %v802_v27, %v7672_v16 }
 0x114   : > { %v1023_v13 = vmul.f32 %v950_v39, %v831_v63 }
 0x116   : > { %3230 = vadd.xlane.f32.xlu1 %v3229_v0  ;;  %v800_v0 = vcombine.high %v784_v50, %v784_v50  ;;  %v1112_v22 = vsel %vm1027_vm1, %v1023_v13, 0.0  ;;  %v3190_v50 = vmul.f32 %v3158_v20, %v7841_v11 }
 0x117   : > { %1092 = vadd.xlane.f32.xlu0 %v1091_v18  ;;  %v3181_v18 = vmul.f32 %v3149_v14, %v7749_v12  ;;  %v3157_v12 = vld [vmem:[%s7644_s28 + $0xe0] sm:$0xff] }
 0x118   : > { %v958_v46 = vrot.slane %v800_v0, %v7672_v16  ;;  %v3189_v53 = vmul.f32 %v3157_v12, %v7841_v11  ;;  %v3280_v58 = vsel %vm1027_vm1, %v3190_v50, 0.0 }
 0x119   : > { %v3253_v23 = vsel %vm1027_vm1, %v3181_v18, 0.0 }
 0x11a   : > { %3233 = vadd.xlane.f32.xlu1 %v3232_v6  ;;  %v833_v6 = vld [vmem:[%s7638_s19 + $0xf0] sm:$0xff]  ;;  %v3277_v56 = vsel %vm1027_vm1, %v3189_v53, 0.0  ;;  %s7271_s19 = smov [#allocation15]  }
 0x11b   : > { %1095 = vadd.xlane.f32.xlu0 %v1094_v29  ;;  %v1115_v29 = vsel %vm1027_vm1, %v1024_v25, 0.0  ;;  %v1025_v9 = vmul.f32 %v958_v46, %v833_v6 }
 0x11d   : > { %v1118_v35 = vsel %vm1027_vm1, %v1025_v9, 0.0 }
 0x11e   : > { %3236 = vadd.xlane.f32.xlu1 %v3235_v21  ;;  %v3256_v21 = vsel %vm1027_vm1, %v3182_v28, 0.0 }
 0x11f   : > { %1098 = vadd.xlane.f32.xlu0 %v1097_v36  ;;  %v1026_v36 = vmul.f32 %v962_v31, %v834_v5 }
 0x121   : > { %v1121_v42 = vsel %vm1027_vm1, %v1026_v36, 0.0 }
 0x122   : > { %3239 = vadd.xlane.f32.xlu1 %v3238_v43  ;;  %v3185_v43 = vmul.f32 %v3153_v37, %v7841_v11 }
 0x123   : > { %1101 = vadd.xlane.f32.xlu0 %v1100_v32  ;;  %v3262_v32 = vsel %vm1027_vm1, %v3184_v40, 0.0 }
 0x124   : > { %v3265_v48 = vsel %vm1027_vm1, %v3185_v43, 0.0 }
 0x126   : > { %1104 = vadd.xlane.f32.xlu1 %v1103_v15  ;;  %v3188_v15 = vmul.f32 %v3156_v51, %v7841_v11 }
 0x127   : > { %3242 = vadd.xlane.f32.xlu0 %v3241_v17  ;;  %v3271_v17 = vsel %vm1027_vm1, %v3187_v49, 0.0 }
 0x128   : > { %v3274_v41 = vsel %vm1027_vm1, %v3188_v15, 0.0 }
 0x12a   : > { %3245 = vadd.xlane.f32.xlu1 %v3244_v24  ;;  %v3160_v24 = vld [vmem:[%s7644_s28 + $0xf8] sm:$0xff]  ;;  %s7099_s28 = sshll.u32 %s7271_s19, 4  ;;  %s7100_s28 = int_to_ptr.vmem [resolvable:$false] %s7099_s28 }
 0x12b   : > { %1107 = vadd.xlane.f32.xlu0 %v1106_v38  ;;  %v3192_v38 = vmul.f32 %v3160_v24, %v7841_v11  ;;  %s7101_s16 = scalar_lea.vmem %s7100_s28, 1024  ;;  %p7102_p3 = scmp.lt.s32.totalorder %s8696_s13, %s7100_s28 }
 0x12c   : > { %p7103_p4 = scmp.lt.s32.totalorder %s7101_s16, %s7095_s11 }
 0x12d   : > { %v3286_v60 = vsel %vm1027_vm1, %v3192_v38, 0.0 }
 0x12e   : > { %3248 = vadd.xlane.f32.xlu1 %v3247_v2  ;;  %p7104_p1 = por %p7103_p4, %p7102_p3 }
 0x12f   : > { %1110 = vadd.xlane.f32.xlu0 %v1109_v10 }
 0x130   : > { %p7105_p13 = pnand %p7104_p1, %p7098_p2 }
 0x132   : > { %3251 = vadd.xlane.f32.xlu1 %v3250_v61 }
 0x133   : > { %1113 = vadd.xlane.f32.xlu0 %v1112_v22 }
 0x136   : > { %3254 = vadd.xlane.f32.xlu1 %v3253_v23 }
 0x137   : > { %1116 = vadd.xlane.f32.xlu0 %v1115_v29 }
 0x13a   : > { %3257 = vadd.xlane.f32.xlu1 %v3256_v21 }
 0x13b   : > { %1119 = vadd.xlane.f32.xlu0 %v1118_v35 }
 0x13e   : > { %3260 = vadd.xlane.f32.xlu1 %v3259_v3 }
 0x13f   : > { %1122 = vadd.xlane.f32.xlu0 %v1121_v42 }
 0x142   : > { %3263 = vadd.xlane.f32.xlu1 %v3262_v32 }
 0x143   : > { %3266 = vadd.xlane.f32.xlu0 %v3265_v48 }
 0x146   : > { %3269 = vadd.xlane.f32.xlu1 %v3268_v52 }
 0x147   : > { %3272 = vadd.xlane.f32.xlu0 %v3271_v17 }
 0x14a   : > { %3275 = vadd.xlane.f32.xlu1 %v3274_v41 }
 0x14b   : > { %3278 = vadd.xlane.f32.xlu0 %v3277_v56 }
 0x14e   : > { %3281 = vadd.xlane.f32.xlu1 %v3280_v58 }
 0x14f   : > { %3284 = vadd.xlane.f32.xlu0 %v3283_v59 }
 0x151   : > { %v8124_v39 = vpop.xlane.xlu0 %3194 }
 0x152   : > { %3287 = vadd.xlane.f32.xlu1 %v3286_v60  ;;  %v8126_v62 = vpop.xlane.xlu1 %3197  ;;  %v3324_v15 = vrot.slane %v8124_v39, %v7658_v7 }
 0x153   : > { %v3328_v20 = vrot.slane %v8126_v62, %v7658_v7 }
 0x15c   : > { %v1030_v63 = vpop.xlane.xlu0 %1029 }
 0x15d   : > { %v1137_v6 = vrot.slane %v1030_v63, %v7658_v7 }
 0x15e   : > { %v1036_v2 = vpop.xlane.xlu1 %1035 }
 0x15f   : > { %v1145_v29 = vrot.slane %v1036_v2, %v7658_v7 }
 0x160   : > { %v8128_v4 = vpop.xlane.xlu0 %1053 }
 0x161   : > { %v1643_v55 = vrot.slane %v8128_v4, %v7658_v7  ;;  %v3449_v4 = vsel %vm1166_vm2, %v3328_v20, %v3324_v15 }
 0x162   : > { %v8130_v10 = vpop.xlane.xlu1 %1056 }
 0x163   : > { %v1647_v41 = vrot.slane %v8130_v10, %v7658_v7 }
 0x164   : > { %v1033_v13 = vpop.xlane.xlu0 %1032 }
 0x165   : > { %v1141_v46 = vrot.slane %v1033_v13, %v7658_v7  ;;  %v1672_v10 = vsel %vm1166_vm2, %v1647_v41, %v1643_v55 }
 0x166   : > { %v1039_v14 = vpop.xlane.xlu1 %1038 }
 0x167   : > { %v1167_v28 = vsel %vm1166_vm2, %v1141_v46, %v1137_v6  ;;  %v1149_v9 = vrot.slane %v1039_v14, %v7658_v7 }
 0x168   : > { %v1042_v11 = vpop.xlane.xlu0 %1041  ;;  %v1169_v31 = vsel %vm1168_vm3, %v1145_v29, %v1167_v28 }
 0x169   : > { %v1153_v21 = vrot.slane %v1042_v11, %v7658_v7  ;;  %v1171_v19 = vsel %vm1170_vm4, %v1149_v9, %v1169_v31 }
 0x16b   : > { %v1045_v57 = vpop.xlane.xlu1 %1044  ;;  %v1173_v37 = vsel %vm1172_vm5, %v1153_v21, %v1171_v19 }
 0x16c   : > { %v1048_v0 = vpop.xlane.xlu0 %1047  ;;  %v1157_v33 = vrot.slane %v1045_v57, %v7658_v7 }
 0x16d   : > { %v1161_v40 = vrot.slane %v1048_v0, %v7658_v7 }
 0x16e   : > { %v1175_v43 = vsel %vm1174_vm6, %v1157_v33, %v1173_v37 }
 0x16f   : > { %v1177_v34 = vsel %vm1176_vm7, %v1161_v40, %v1175_v43 }
 0x170   : > { %v1051_v54 = vpop.xlane.xlu1 %1050 }
 0x171   : > { %v8132_v61 = vpop.xlane.xlu0 %1059  ;;  %v1165_v45 = vrot.slane %v1051_v54, %v7658_v7 }
 0x172   : > { %v1651_v56 = vrot.slane %v8132_v61, %v7658_v7 }
 0x173   : > { %v1179_v49 = vsel %vm1178_vm8, %v1165_v45, %v1177_v34 }
 0x174   : > { %v1673_v57 = vsel %vm1168_vm3, %v1651_v56, %v1672_v10 }
 0x175   : > { %v8134_v18 = vpop.xlane.xlu1 %3200 }
 0x176   : > { %v8136_v22 = vpop.xlane.xlu0 %1062  ;;  %v3332_v58 = vrot.slane %v8134_v18, %v7658_v7 }
 0x177   : > { %v1655_v38 = vrot.slane %v8136_v22, %v7658_v7 }
 0x179   : > { %v8138_v25 = vpop.xlane.xlu1 %3203 }
 0x17a   : > { %v3336_v62 = vrot.slane %v8138_v25, %v7658_v7  ;;  %v3450_v25 = vsel %vm1168_vm3, %v3332_v58, %v3449_v4 }
 0x17b   : > { %v8140_v26 = vpop.xlane.xlu0 %1065 }
 0x17c   : > { %v1659_v63 = vrot.slane %v8140_v26, %v7658_v7  ;;  %v1674_v26 = vsel %vm1170_vm4, %v1655_v38, %v1673_v57  ;;  %v3451_v28 = vsel %vm1170_vm4, %v3336_v62, %v3450_v25 }
 0x17e   : > { %v8143_v27 = vpop.xlane.xlu1 %3206  ;;  %v1675_v29 = vsel %vm1172_vm5, %v1659_v63, %v1674_v26 }
 0x17f   : > { %v3340_v13 = vrot.slane %v8143_v27, %v7658_v7 }
 0x180   : > { %v8146_v23 = vpop.xlane.xlu0 %1068 }
 0x181   : > { %v1663_v14 = vrot.slane %v8146_v23, %v7658_v7 }
 0x183   : > { %v8151_v47 = vpop.xlane.xlu1 %3209  ;;  %v1676_v21 = vsel %vm1174_vm6, %v1663_v14, %v1675_v29 }
 0x184   : > { %v8154_v5 = vpop.xlane.xlu0 %1071  ;;  %v3344_v0 = vrot.slane %v8151_v47, %v7658_v7 }
 0x185   : > { %v1667_v54 = vrot.slane %v8154_v5, %v7658_v7  ;;  %v3452_v5 = vsel %vm1172_vm5, %v3340_v13, %v3451_v28 }
 0x186   : > { %v3453_v19 = vsel %vm1174_vm6, %v3344_v0, %v3452_v5 }
 0x187   : > { %v8158_v35 = vpop.xlane.xlu1 %3212  ;;  %v1677_v33 = vsel %vm1176_vm7, %v1667_v54, %v1676_v21 }
 0x188   : > { %v8160_v36 = vpop.xlane.xlu0 %1074  ;;  %v3348_v46 = vrot.slane %v8158_v35, %v7658_v7 }
 0x189   : > { %v1671_v27 = vrot.slane %v8160_v36, %v7658_v7 }
 0x18a   : > { %v3454_v37 = vsel %vm1176_vm7, %v3348_v46, %v3453_v19 }
 0x18b   : > { %v8164_v3 = vpop.xlane.xlu1 %3215 }
 0x18c   : > { %v8167_v42 = vpop.xlane.xlu0 %1077  ;;  %v3352_v9 = vrot.slane %v8164_v3, %v7658_v7  ;;  %v1678_v3 = vsel %vm1178_vm8, %v1671_v27, %v1677_v33 }
 0x18d   : > { %v2142_v28 = vrot.slane %v8167_v42, %v7658_v7 }
 0x18e   : > { %v3455_v34 = vsel %vm1178_vm8, %v3352_v9, %v3454_v37 }
 0x18f   : > { %v8171_v30 = vpop.xlane.xlu1 %1080 }
 0x190   : > { %v8173_v32 = vpop.xlane.xlu0 %3218  ;;  %v2146_v29 = vrot.slane %v8171_v30, %v7658_v7 }
 0x193   : > { %v8176_v48 = vpop.xlane.xlu1 %3221  ;;  %v1258_v51 = vpop.f32.mrf.mxu0 }
 0x194   : > { %v8179_v12 = vpop.xlane.xlu0 %1083  ;;  %v1259_v52 = vadd.f32 %v1258_v51, %v1179_v49  ;;  %v3360_v58 = vrot.slane %v8176_v48, %v7658_v7 }
 0x195   : > { %v6499_v17 = vpop.f32.mrf.mxu0  ;;  %v1334_v53 = vpop.f32.mrf.mxu1 }
 0x196   : > { %v1335_v50 = vadd.f32 %v1334_v53, %v1259_v52  ;;  %v8239_v53 = vld [vmem:[%s523_s21] sm:$0xff] }
 0x197   : > { %v8191_v44 = vpop.xlane.xlu1 %3224  ;;  %v1408_v24 = vpop.f32.mrf.mxu0 }
 0x198   : > { %v8197_v59 = vpop.xlane.xlu0 %1086  ;;  %v1409_v60 = vadd.f32 %v1408_v24, %v1335_v50  ;;  %v6504_v39 = vpop.f32.mrf.mxu1  ;;  %v3356_v24 = vrot.slane %v8173_v32, %v7658_v7 }
 0x199   : > { %v6509_v2 = vpop.f32.mrf.mxu0  ;;  %v3364_v39 = vrot.slane %v8191_v44, %v7658_v7 }
 0x19a   : > { %v1482_v11 = vpop.f32.mrf.mxu1  ;;  %v3456_v14 = vsel %vm1166_vm2, %v3360_v58, %v3356_v24 }
 0x19b   : > { %v8214_v61 = vpop.xlane.xlu1 %3227  ;;  %v1483_v18 = vadd.f32 %v1482_v11, %v1409_v60  ;;  %v1556_v22 = vpop.f32.mrf.mxu0  ;;  %v3457_v0 = vsel %vm1168_vm3, %v3364_v39, %v3456_v14 }
 0x19c   : > { %v8222_v6 = vpop.xlane.xlu0 %1089  ;;  %v6514_v23 = vpop.f32.mrf.mxu1  ;;  %v3368_v4 = vrot.slane %v8214_v61, %v7658_v7 }
 0x19d   : > { %v1557_v47 = vadd.f32 %v1556_v22, %v1483_v18  ;;  %v6519_v31 = vpop.f32.mrf.mxu0  ;;  %v2158_v30 = vrot.slane %v8222_v6, %v7658_v7 }
 0x19e   : > { %v3458_v22 = vsel %vm1170_vm4, %v3368_v4, %v3457_v0  ;;  %v2150_v31 = vrot.slane %v8179_v12, %v7658_v7  ;;  %v2171_v12 = vsel %vm1166_vm2, %v2146_v29, %v2142_v28 }
 0x19f   : > { %v3231_v35 = vpop.xlane.xlu1 %3230  ;;  %v1628_v36 = vpop.f32.mrf.mxu1 }
 0x1a0   : > { %v8235_v40 = vpop.xlane.xlu0 %1092  ;;  %v1629_v43 = vadd.f32 %v1628_v36, %v1557_v47  ;;  %v1757_v45 = vpop.f32.mrf.mxu0  ;;  %v3372_v13 = vrot.slane %v3231_v35, %v7658_v7  ;;  %v2154_v36 = vrot.slane %v8197_v59, %v7658_v7 }
 0x1a1   : > { %v1758_v49 = vadd.f32 %v1757_v45, %v1678_v3  ;;  %v6524_v51 = vpop.f32.mrf.mxu1  ;;  %v2162_v45 = vrot.slane %v8235_v40, %v7658_v7 }
 0x1a2   : > { %v3481_v52 = vadd.f32 %v3455_v34, %v1629_v43  ;;  %v6529_v15 = vpop.f32.mrf.mxu0  ;;  %v3459_v23 = vsel %vm1172_vm5, %v3372_v13, %v3458_v22  ;;  %v2172_v34 = vsel %vm1168_vm3, %v2150_v31, %v2171_v12 }
 0x1a3   : > { %v3234_v17 = vpop.xlane.xlu1 %3233  ;;  %v2173_v15 = vsel %vm1170_vm4, %v2154_v36, %v2172_v34 }
 0x1a4   : > { %v3485_v20 = vmul.f32 0.35355338, %v3481_v52  ;;  %v8241_v55 = vpop.xlane.xlu0 %1095  ;;  %v1833_v41 = vpop.f32.mrf.mxu1  ;;  %v3376_v11 = vrot.slane %v3234_v17, %v7658_v7 }
 0x1a5   : > { %v1834_v50 = vadd.f32 %v1833_v41, %v1758_v49  ;;  %v1907_v56 = vpop.f32.mrf.mxu0  ;;  %v2166_v59 = vrot.slane %v8241_v55, %v7658_v7 }
 0x1a6   : > { %v6534_v38 = vpop.f32.mrf.mxu1  ;;  %v8248_v60 = vadd.f32 %v8239_v53, %v3485_v20  ;;  %v3460_v9 = vsel %vm1174_vm6, %v3376_v11, %v3459_v23  ;;  %v2174_v20 = vsel %vm1172_vm5, %v2158_v30, %v2173_v15 }
 0x1a7   : > { %v3237_v62 = vpop.xlane.xlu1 %3236  ;;  %v1908_v63 = vadd.f32 %v1907_v56, %v1834_v50  ;;  %v6539_v2 = vpop.f32.mrf.mxu0  ;;  %v2175_v40 = vsel %vm1174_vm6, %v2162_v45, %v2174_v20 }
 0x1a8   : > { %v1099_v10 = vpop.xlane.xlu0 %1098  ;;  %v3494_v32 = vsel %vm1027_vm1, %v8248_v60, -inf  ;;  %v3380_v54 = vrot.slane %v3237_v62, %v7658_v7  ;;  %v2176_v24 = vsel %vm1176_vm7, %v2166_v59, %v2175_v40 }
 0x1a9   : > { %v1981_v48 = vpop.f32.mrf.mxu1  ;;  %3495 = vmax.xlane.f32.xlu0 %v3494_v32  ;;  %v2170_v17 = vrot.slane %v1099_v10, %v7658_v7 }
 0x1aa   : > { %v1982_v57 = vadd.f32 %v1981_v48, %v1908_v63  ;;  %v2055_v44 = vpop.f32.mrf.mxu0  ;;  %v3461_v5 = vsel %vm1176_vm7, %v3380_v54, %v3460_v9 }
 0x1ab   : > { %v3240_v18 = vpop.xlane.xlu1 %3239  ;;  %v6544_v61 = vpop.f32.mrf.mxu1  ;;  %v2177_v39 = vsel %vm1178_vm8, %v2170_v17, %v2176_v24 }
 0x1ac   : > { %v3384_v25 = vrot.slane %v3240_v18, %v7658_v7  ;;  %v8263_v26 = vpop.xlane.xlu0 %1101  ;;  %v2056_v46 = vadd.f32 %v2055_v44, %v1982_v57  ;;  %v6549_v27 = vpop.f32.mrf.mxu0 }
 0x1ad   : > { %v2641_v18 = vrot.slane %v8263_v26, %v7658_v7 }
 0x1ae   : > { %v2127_v47 = vpop.f32.mrf.mxu1  ;;  %v3462_v33 = vsel %vm1178_vm8, %v3384_v25, %v3461_v5 }
 0x1af   : > { %v1105_v21 = vpop.xlane.xlu1 %1104  ;;  %v2128_v19 = vadd.f32 %v2127_v47, %v2056_v46  ;;  %v2256_v35 = vpop.f32.mrf.mxu0 }
 0x1b0   : > { %v8277_v42 = vpop.xlane.xlu0 %3242  ;;  %v6554_v37 = vpop.f32.mrf.mxu1  ;;  %v2257_v2 = vadd.f32 %v2256_v35, %v2177_v39  ;;  %v2645_v61 = vrot.slane %v1105_v21, %v7658_v7 }
 0x1b1   : > { %v3482_v43 = vadd.f32 %v3462_v33, %v2128_v19  ;;  %v6559_v3 = vpop.f32.mrf.mxu0  ;;  %v3388_v23 = vrot.slane %v8277_v42, %v7658_v7 }
 0x1b2   : > { %v2670_v21 = vsel %vm1166_vm2, %v2645_v61, %v2641_v18 }
 0x1b3   : > { %v3486_v49 = vmul.f32 0.35355338, %v3482_v43  ;;  %v3246_v51 = vpop.xlane.xlu1 %3245  ;;  %v2332_v52 = vpop.f32.mrf.mxu1 }
 0x1b4   : > { %v1108_v6 = vpop.xlane.xlu0 %1107  ;;  %v2333_v14 = vadd.f32 %v2332_v52, %v2257_v2  ;;  %v3392_v28 = vrot.slane %v3246_v51, %v7658_v7 }
 0x1b5   : > { %v6564_v41 = vpop.f32.mrf.mxu1  ;;  %v2406_v50 = vpop.f32.mrf.mxu0  ;;  %v8291_v56 = vadd.f32 %v8239_v53, %v3486_v49  ;;  %v2649_v25 = vrot.slane %v1108_v6, %v7658_v7 }
 0x1b6   : > { %v2407_v22 = vadd.f32 %v2406_v50, %v2333_v14  ;;  %v3463_v30 = vsel %vm1166_vm2, %v3392_v28, %v3388_v23 }
 0x1b7   : > { %v3249_v55 = vpop.xlane.xlu1 %3248  ;;  %v6569_v58 = vpop.f32.mrf.mxu0  ;;  %v3497_v38 = vsel %vm1027_vm1, %v8291_v56, -inf  ;;  %v2671_v33 = vsel %vm1168_vm3, %v2649_v25, %v2670_v21 }
 0x1b8   : > { %v2480_v62 = vpop.f32.mrf.mxu1  ;;  %v1111_v63 = vpop.xlane.xlu0 %1110  ;;  %3498 = vmax.xlane.f32.xlu1 %v3497_v38  ;;  %v3396_v47 = vrot.slane %v3249_v55, %v7658_v7 }
 0x1b9   : > { %v2653_v29 = vrot.slane %v1111_v63, %v7658_v7  ;;  %v2481_v19 = vadd.f32 %v2480_v62, %v2407_v22 }
 0x1ba   : > { %v6574_v4 = vpop.f32.mrf.mxu1  ;;  %v2554_v10 = vpop.f32.mrf.mxu0  ;;  %v3464_v34 = vsel %vm1168_vm3, %v3396_v47, %v3463_v30 }
 0x1bb   : > { %v3252_v32 = vpop.xlane.xlu1 %3251  ;;  %v2672_v43 = vsel %vm1170_vm4, %v2653_v29, %v2671_v33  ;;  %v2555_v15 = vadd.f32 %v2554_v10, %v2481_v19 }
 0x1bc   : > { %v2626_v13 = vpop.f32.mrf.mxu1  ;;  %v1114_v48 = vpop.xlane.xlu0 %1113  ;;  %v3400_v42 = vrot.slane %v3252_v32, %v7658_v7 }
 0x1bd   : > { %v6579_v11 = vpop.f32.mrf.mxu0  ;;  %v2657_v31 = vrot.slane %v1114_v48, %v7658_v7  ;;  %v2627_v10 = vadd.f32 %v2626_v13, %v2555_v15 }
 0x1be   : > { %v6584_v57 = vpop.f32.mrf.mxu1  ;;  %v3465_v41 = vsel %vm1170_vm4, %v3400_v42, %v3464_v34 }
 0x1bf   : > { %v3255_v44 = vpop.xlane.xlu1 %3254  ;;  %v2673_v59 = vsel %vm1172_vm5, %v2657_v31, %v2672_v43 }
 0x1c0   : > { %v1117_v0 = vpop.xlane.xlu0 %1116  ;;  %v2755_v54 = vpop.f32.mrf.mxu0  ;;  %v3404_v3 = vrot.slane %v3255_v44, %v7658_v7 }
 0x1c1   : > { %v2661_v35 = vrot.slane %v1117_v0, %v7658_v7 }
 0x1c2   : > { %v6589_v46 = vpop.f32.mrf.mxu0  ;;  %v2831_v27 = vpop.f32.mrf.mxu1  ;;  %v3466_v24 = vsel %vm1172_vm5, %v3404_v3, %v3465_v41 }
 0x1c3   : > { %v3258_v9 = vpop.xlane.xlu1 %3257  ;;  %v2674_v17 = vsel %vm1174_vm6, %v2661_v35, %v2673_v59 }
 0x1c4   : > { %v1120_v26 = vpop.xlane.xlu0 %1119  ;;  %v6594_v5 = vpop.f32.mrf.mxu1  ;;  %v3408_v49 = vrot.slane %v3258_v9, %v7658_v7 }
 0x1c5   : > { %v2905_v36 = vpop.f32.mrf.mxu0  ;;  %v2665_v37 = vrot.slane %v1120_v26, %v7658_v7 }
 0x1c6   : > { %v3467_v39 = vsel %vm1174_vm6, %v3408_v49, %v3466_v24 }
 0x1c7   : > { %v3261_v12 = vpop.xlane.xlu1 %3260  ;;  %v6599_v45 = vpop.f32.mrf.mxu0  ;;  %v2675_v50 = vsel %vm1176_vm7, %v2665_v37, %v2674_v17 }
 0x1c8   : > { %v1123_v51 = vpop.xlane.xlu0 %1122  ;;  %v2979_v52 = vpop.f32.mrf.mxu1  ;;  %v3412_v6 = vrot.slane %v3261_v12, %v7658_v7 }
 0x1c9   : > { %v2669_v20 = vrot.slane %v1123_v51, %v7658_v7 }
 0x1ca   : > { %v6604_v40 = vpop.f32.mrf.mxu1  ;;  %v3053_v38 = vpop.f32.mrf.mxu0  ;;  %v3468_v32 = vsel %vm1176_vm7, %v3412_v6, %v3467_v39 }
 0x1cb   : > { %v3264_v55 = vpop.xlane.xlu1 %3263  ;;  %v2676_v58 = vsel %vm1178_vm8, %v2669_v20, %v2675_v50 }
 0x1cc   : > { %v3416_v62 = vrot.slane %v3264_v55, %v7658_v7  ;;  %v2756_v63 = vadd.f32 %v2755_v54, %v2676_v58  ;;  %v3267_v2 = vpop.xlane.xlu0 %3266  ;;  %v3125_v4 = vpop.f32.mrf.mxu1  ;;  %v599_v55 = vld [vmem:[%s7636_s9] sm:$0xff] }
 0x1cd   : > { %v6609_v48 = vpop.f32.mrf.mxu0  ;;  %v3420_v11 = vrot.slane %v3267_v2, %v7658_v7  ;;  %v8357_v58 = vand.u32 4294901760, %v599_v55 }
 0x1ce   : > { %v3469_v14 = vsel %vm1178_vm8, %v3416_v62, %v3468_v32  ;;  %v2832_v57 = vadd.f32 %v2831_v27, %v2756_v63  ;;  %v6614_v44 = vpop.f32.mrf.mxu1 }
 0x1cf   : > { %v3270_v0 = vpop.xlane.xlu1 %3269  ;;  %v3483_v18 = vadd.f32 %v3469_v14, %v2627_v10  ;;  %v8360_v39 = vsub.f32 %v599_v55, %v8357_v58  ;;  %6616 = vmatpush3.msra.mxu0 %v8357_v58 }
 0x1d0   : > { %v3424_v61 = vrot.slane %v3270_v0, %v7658_v7  ;;  %v3273_v22 = vpop.xlane.xlu0 %3272  ;;  %v2906_v25 = vadd.f32 %v2905_v36, %v2832_v57  ;;  %6625 = vmatprep.subr.mxu0 %v7268_v1  ;;  %v600_v0 = vld [vmem:[%s7636_s9 + $0x8] sm:$0xff] }
 0x1d1   : > { %v3428_v54 = vrot.slane %v3273_v22, %v7658_v7  ;;  %v3487_v46 = vmul.f32 0.35355338, %v3483_v18  ;;  %v4221_v62 = vand.u32 4294901760, %v8360_v39  ;;  %v8378_v18 = vand.u32 4294901760, %v600_v0 }
 0x1d2   : > { %v3470_v13 = vsel %vm1166_vm2, %v3424_v61, %v3420_v11  ;;  %v2980_v47 = vadd.f32 %v2979_v52, %v2906_v25 }
 0x1d3   : > { %v3471_v23 = vsel %vm1168_vm3, %v3428_v54, %v3470_v13  ;;  %v3276_v28 = vpop.xlane.xlu1 %3275  ;;  %v3492_v29 = vadd.f32 %v8239_v53, %v3487_v46  ;;  %v4222_v63 = vsub.f32 %v8360_v39, %v4221_v62  ;;  %v8381_v54 = vsub.f32 %v600_v0, %v8378_v18 }
 0x1d4   : > { %v3432_v9 = vrot.slane %v3276_v28, %v7658_v7  ;;  %v3279_v27 = vpop.xlane.xlu0 %3278  ;;  %v3054_v33 = vadd.f32 %v3053_v38, %v2980_v47 }
 0x1d5   : > { %v3436_v31 = vrot.slane %v3279_v27, %v7658_v7  ;;  %v3500_v26 = vsel %vm1027_vm1, %v3492_v29, -inf  ;;  %v4223_v2 = vand.u32 4294901760, %v4222_v63  ;;  %v4717_v27 = vand.u32 4294901760, %v8381_v54 }
 0x1d6   : > { %v3472_v5 = vsel %vm1170_vm4, %v3432_v9, %v3471_v23  ;;  %3501 = vmax.xlane.f32.xlu0 %v3500_v26  ;;  %v3126_v12 = vadd.f32 %v3125_v4, %v3054_v33  ;;  %v3742_v26 = vld [vmem:[%s7646_s17] sm:$0xff]  ;;  %v3744_v33 = vld [vmem:[%s7646_s17 + $0x10] sm:$0xff] }
 0x1d7   : > { %v3473_v21 = vsel %vm1172_vm5, %v3436_v31, %v3472_v5  ;;  %v3282_v19 = vpop.xlane.xlu1 %3281  ;;  %6621 = vmatpush3.msra.mxu1 %v4223_v2 }
 0x1d8   : > { %v3440_v35 = vrot.slane %v3282_v19, %v7658_v7  ;;  %v3285_v36 = vpop.xlane.xlu0 %3284  ;;  %6630 = vmatprep.subr.mxu1 %v7268_v1 }
 0x1d9   : > { %v3444_v42 = vrot.slane %v3285_v36, %v7658_v7  ;;  %v3743_v36 = vld [vmem:[%s7646_s17 + $0x8] sm:$0xff] }
 0x1da   : > { %v3474_v37 = vsel %vm1174_vm6, %v3440_v35, %v3473_v21 }
 0x1db   : > { %v3475_v30 = vsel %vm1176_vm7, %v3444_v42, %v3474_v37  ;;  %v3288_v43 = vpop.xlane.xlu1 %3287 }
 0x1dc   : > { %v3448_v3 = vrot.slane %v3288_v43, %v7658_v7 }
 0x1de   : > { %v3476_v45 = vsel %vm1178_vm8, %v3448_v3, %v3475_v30  ;;  %v4718_v3 = vsub.f32 %v8381_v54, %v4717_v27 }
 0x1df   : > { %v3484_v34 = vadd.f32 %v3476_v45, %v3126_v12  ;;  %v601_v12 = vld [vmem:[%s7636_s9 + $0x10] sm:$0xff] }
 0x1e1   : > { %v3488_v59 = vmul.f32 0.35355338, %v3484_v34 }
 0x1e3   : > { %v3493_v49 = vadd.f32 %v8239_v53, %v3488_v59 }
 0x1e5   : > { %v3503_v51 = vsel %vm1027_vm1, %v3493_v49, -inf }
 0x1e6   : > { %3504 = vmax.xlane.f32.xlu1 %v3503_v51 }
 0x232   : > { %v3496_v52 = vpop.xlane.xlu0 %3495 }
 0x233   : > { %v3506_v15 = vsub.f32 %v8248_v60, %v3496_v52 }
 0x235   : > { %v3510_v17 = vmul.f32 1.442695, %v3506_v15 }
 0x237   : > { %6883 = vpow2.f32 %v3510_v17 }
 0x241   : > { %v3499_v6 = vpop.xlane.xlu1 %3498 }
 0x242   : > { %v3507_v20 = vsub.f32 %v8291_v56, %v3499_v6  ;;  %v3746_v6 = vld [vmem:[%s7646_s17 + $0x20] sm:$0xff] }
 0x244   : > { %v6884_v41 = vpop.eup %6883  ;;  %v3512_v50 = vmul.f32 1.442695, %v3507_v20  ;;  %v8423_v20 = vand.u32 4294901760, %v601_v12 }
 0x245   : > { %v3518_v40 = vsel %vm1027_vm1, %v6884_v41, 0.0 }
 0x246   : > { %6885 = vpow2.f32 %v3512_v50  ;;  %3519 = vadd.xlane.f32.xlu0 %v3518_v40  ;;  %v4719_v50 = vand.u32 4294901760, %v4718_v3  ;;  %v8438_v63 = vsub.f32 %v601_v12, %v8423_v20 }
 0x253   : > { %v8352_v24 = vpop.eup %6885 }
 0x254   : > { %v3521_v53 = vsel %vm1027_vm1, %v8352_v24, 0.0 }
 0x255   : > { %3522 = vadd.xlane.f32.xlu1 %v3521_v53 }
 0x25f   : > { %v3502_v60 = vpop.xlane.xlu0 %3501 }
 0x260   : > { %v3508_v38 = vsub.f32 %v3492_v29, %v3502_v60 }
 0x262   : > { %v3514_v56 = vmul.f32 1.442695, %v3508_v38 }
 0x264   : > { %6887 = vpow2.f32 %v3514_v56  ;;  %v3745_v56 = vld [vmem:[%s7646_s17 + $0x18] sm:$0xff] }
 0x26f   : > { %v3505_v4 = vpop.xlane.xlu1 %3504 }
 0x270   : > { %v3509_v10 = vsub.f32 %v3493_v49, %v3505_v4 }
 0x271   : > { %v8369_v32 = vpop.eup %6887 }
 0x272   : > { %v3516_v48 = vmul.f32 1.442695, %v3509_v10  ;;  %v3524_v14 = vsel %vm1027_vm1, %v8369_v32, 0.0 }
 0x273   : > { %3525 = vadd.xlane.f32.xlu0 %v3524_v14 }
 0x274   : > { %6889 = vpow2.f32 %v3516_v48 }
 0x281   : > { %v8373_v11 = vpop.eup %6889 }
 0x282   : > { %v3527_v57 = vsel %vm1027_vm1, %v8373_v11, 0.0 }
 0x283   : > { %3528 = vadd.xlane.f32.xlu1 %v3527_v57 }
 0x2cf   : > { %v3520_v44 = vpop.xlane.xlu0 %3519 }
 0x2d0   : > { %6891 = vrcp.f32 %v3520_v44 }
 0x2dd   : > { %v6892_v61 = vpop.eup %6891 }
 0x2de   : > { %v3531_v22 = vmul.f32 %v6892_v61, %v6884_v41  ;;  %v3523_v25 = vpop.xlane.xlu1 %3522  ;;  %v3747_v61 = vld [vmem:[%s7646_s17 + $0x28] sm:$0xff] }
 0x2df   : > { %6893 = vrcp.f32 %v3523_v25  ;;  %v5213_v25 = vand.u32 4294901760, %v8438_v63 }
 0x2e0   : > { %3538 = vst.msk [vmem:[%s8384_s5] sm:$0xff] %vm1027_vm1, %v3531_v22  ;;  %v4110_v46 = vsel %vm1027_vm1, %v3531_v22, 0  ;;  %v3553_v13 = vrot.slane %v3531_v22, %v7660_v8  ;;  %v3546_v23 = vcombine.high %v3531_v22, %v3531_v22 }
 0x2e1   : > { %v8390_v28 = vand.u32 4294901760, %v4110_v46 }
 0x2e2   : > { %v3569_v29 = vrot.slane %v3553_v13, %v7660_v8  ;;  %v3561_v9 = vcombine.high %v3553_v13, %v3553_v13  ;;  %v3560_v47 = vrot.slane %v3546_v23, %v7660_v8 }
 0x2e3   : > { %v4179_v31 = vsub.f32 %v4110_v46, %v8390_v28  ;;  %6623 = vmatmul.mubr.f32.vlgmr.msra.gmra.mxu1 %v8390_v28 }
 0x2e4   : > { %6631 = vmatpush3.msra.mxu1 %v8357_v58  ;;  %6632 = vmatprep.mubr.msk.f32.mxu1 %vm7270_vm0, %v7268_v1  ;;  %v3777_v5 = vrot.slane %v3569_v29, %v7672_v16  ;;  %v3583_v21 = vrot.slane %v3561_v9, %v7660_v8  ;;  %v3591_v19 = vcombine.high %v3569_v29, %v3569_v29  ;;  %v3751_v9 = vld [vmem:[%s7646_s17 + $0x48] sm:$0xff] }
 0x2e5   : > { %v4180_v35 = vand.u32 4294901760, %v4179_v31  ;;  %6640 = vmatprep.subr.mxu1 %v7268_v1  ;;  %v8407_v42 = vrot.slane %v3560_v47, %v7660_v8  ;;  %v3562_v59 = vcombine.high %v3560_v47, %v3560_v47 }
 0x2e6   : > { %v3934_v37 = vmul.f32 %v3777_v5, %v3742_v26  ;;  %v3781_v30 = vrot.slane %v3583_v21, %v7672_v16  ;;  %v3785_v43 = vrot.slane %v3591_v19, %v7672_v16  ;;  %v3593_v34 = vcombine.high %v3583_v21, %v3583_v21  ;;  %v3748_v5 = vld [vmem:[%s7646_s17 + $0x30] sm:$0xff] }
 0x2e7   : > { %6633 = vmatmul.mubr.f32.vlgmr.msra.gmra.mxu1 %v4180_v35  ;;  %v4181_v45 = vsub.f32 %v4179_v31, %v4180_v35  ;;  %v3793_v15 = vrot.slane %v8407_v42, %v7672_v16  ;;  %v8431_v60 = vrot.slane %v3562_v59, %v7660_v8  ;;  %v3592_v4 = vcombine.high %v8407_v42, %v8407_v42 }
 0x2e8   : > { %v3966_v49 = vsel %vm1027_vm1, %v3934_v37, 0.0  ;;  %6641 = vmatpush3.msra.mxu1 %v8357_v58  ;;  %6642 = vmatprep.mubr.msk.f32.mxu1 %vm7270_vm0, %v7268_v1  ;;  %v3935_v51 = vmul.f32 %v3781_v30, %v3743_v36  ;;  %v3936_v52 = vmul.f32 %v3785_v43, %v3744_v33  ;;  %v3789_v58 = vrot.slane %v3593_v34, %v7672_v16  ;;  %v3752_v33 = vld [vmem:[%s7646_s17 + $0x50] sm:$0xff] }
 0x2e9   : > { %3967 = vadd.xlane.f32.xlu0 %v3966_v49  ;;  %v4182_v17 = vand.u32 4294901760, %v4181_v45  ;;  %6650 = vmatprep.subr.mxu1 %v7268_v1  ;;  %v3938_v55 = vmul.f32 %v3793_v15, %v3746_v6  ;;  %v3797_v44 = vrot.slane %v8431_v60, %v7672_v16 }
 0x2ea   : > { %v3969_v41 = vsel %vm1027_vm1, %v3935_v51, 0.0  ;;  %v3972_v53 = vsel %vm1027_vm1, %v3936_v52, 0.0  ;;  %v3937_v57 = vmul.f32 %v3789_v58, %v3745_v56  ;;  %v3754_v51 = vld [vmem:[%s7646_s17 + $0x60] sm:$0xff]  ;;  %v3755_v56 = vld [vmem:[%s7646_s17 + $0x68] sm:$0xff] }
 0x2eb   : > { %6618 = vmatmul.mubr.f32.vlgmr.msra.gmra.mxu0 %v4182_v17  ;;  %6643 = vmatmul.mubr.f32.vlgmr.msra.gmra.mxu1 %v8390_v28  ;;  %v3978_v14 = vsel %vm1027_vm1, %v3938_v55, 0.0  ;;  %v3939_v47 = vmul.f32 %v3797_v44, %v3747_v61 }
 0x2ec   : > { %v6894_v40 = vpop.eup %6893  ;;  %3970 = vadd.xlane.f32.xlu1 %v3969_v41  ;;  %6626 = vmatpush3.msra.mxu0 %v8360_v39  ;;  %v3975_v29 = vsel %vm1027_vm1, %v3937_v57, 0.0 }
 0x2ed   : > { %v3533_v38 = vmul.f32 %v6894_v40, %v8352_v24  ;;  %3973 = vadd.xlane.f32.xlu0 %v3972_v53  ;;  %6627 = vmatprep.mubr.msk.f32.mxu0 %vm7270_vm0, %v7268_v1  ;;  %v3981_v37 = vsel %vm1027_vm1, %v3939_v47, 0.0  ;;  %v3753_v53 = vld [vmem:[%s7646_s17 + $0x58] sm:$0xff] }
 0x2ee   : > { %6651 = vmatpush3.msra.mxu1 %v4719_v50  ;;  %6652 = vmatprep.mubr.msk.f32.mxu1 %vm7270_vm0, %v7268_v1 }
 0x2ef   : > { %3539 = vst.msk [vmem:[%s8384_s5 + $0x8] sm:$0xff] %vm1027_vm1, %v3533_v38  ;;  %6628 = vmatmul.mubr.f32.vlgmr.msra.gmra.mxu0 %v4179_v31  ;;  %v4606_v2 = vsel %vm1027_vm1, %v3533_v38, 0  ;;  %6635 = vmatprep.subr.mxu0 %v7268_v1  ;;  %v3602_v24 = vrot.slane %v3533_v38, %v7660_v8  ;;  %v3595_v10 = vcombine.high %v3533_v38, %v3533_v38 }
 0x2f0   : > { %v8449_v48 = vand.u32 4294901760, %v4606_v2  ;;  %6660 = vmatprep.subr.mxu1 %v7268_v1  ;;  %6636 = vmatpush3.msra.mxu0 %v4221_v62  ;;  %v3801_v31 = vrot.slane %v3592_v4, %v7672_v16 }
 0x2f1   : > { %3979 = vadd.xlane.f32.xlu0 %v3978_v14  ;;  %6637 = vmatprep.mubr.msk.f32.mxu0 %vm7270_vm0, %v7268_v1  ;;  %v3610_v0 = vcombine.high %v3602_v24, %v3602_v24  ;;  %v3618_v22 = vrot.slane %v3602_v24, %v7660_v8  ;;  %v3609_v39 = vrot.slane %v3595_v10, %v7660_v8 }
 0x2f2   : > { %v4675_v46 = vsub.f32 %v4606_v2, %v8449_v48  ;;  %6653 = vmatmul.mubr.f32.vlgmr.msra.gmra.mxu1 %v8449_v48  ;;  %6645 = vmatprep.subr.mxu0 %v7268_v1  ;;  %v3940_v30 = vmul.f32 %v3801_v31, %v3748_v5  ;;  %v602_v2 = vld [vmem:[%s7636_s9 + $0x18] sm:$0xff]  ;;  %v3758_v5 = vld [vmem:[%s7646_s17 + $0x80] sm:$0xff]  ;;  %s6056_s9 = scalar_lea.sflag [#allocation16], %s7611_s25 }
 0x2f3   : > { %6661 = vmatpush3.msra.mxu1 %v8378_v18  ;;  %6662 = vmatprep.mubr.msk.f32.mxu1 %vm7270_vm0, %v7268_v1  ;;  %v3632_v62 = vrot.slane %v3610_v0, %v7660_v8  ;;  %v3640_v13 = vcombine.high %v3618_v22, %v3618_v22  ;;  %v3625_v35 = vrot.slane %v3609_v39, %v7660_v8  ;;  %v8531_v14 = vand.u32 4294901760, %v602_v2 }
 0x2f4   : > { %6638 = vmatmul.mubr.f32.vlgmr.msra.gmra.mxu0 %v8390_v28  ;;  %v4676_v23 = vand.u32 4294901760, %v4675_v46  ;;  %6670 = vmatprep.subr.mxu1 %v7268_v1  ;;  %v5214_v28 = vsub.f32 %v8438_v63, %v5213_v25  ;;  %v3809_v43 = vrot.slane %v3618_v22, %v7672_v16  ;;  %v3611_v12 = vcombine.high %v3609_v39, %v3609_v39 }
 0x2f5   : > { %3976 = vadd.xlane.f32.xlu0 %v3975_v29  ;;  %6646 = vmatpush3.msra.mxu0 %v8378_v18  ;;  %v3813_v26 = vrot.slane %v3632_v62, %v7672_v16  ;;  %v3817_v19 = vrot.slane %v3640_v13, %v7672_v16  ;;  %v3825_v59 = vrot.slane %v3625_v35, %v7672_v16  ;;  %v3984_v15 = vsel %vm1027_vm1, %v3940_v30, 0.0 }
 0x2f6   : > { %6663 = vmatmul.mubr.f32.vlgmr.msra.gmra.mxu1 %v4676_v23  ;;  %6647 = vmatprep.mubr.msk.f32.mxu0 %vm7270_vm0, %v7268_v1  ;;  %v4677_v21 = vsub.f32 %v4675_v46, %v4676_v23  ;;  %v5215_v45 = vand.u32 4294901760, %v5214_v28  ;;  %v3642_v49 = vcombine.high %v3632_v62, %v3632_v62  ;;  %v8506_v40 = vrot.slane %v3611_v12, %v7660_v8 }
 0x2f7   : > { %6671 = vmatpush3.msra.mxu1 %v8378_v18  ;;  %6672 = vmatprep.mubr.msk.f32.mxu1 %vm7270_vm0, %v7268_v1  ;;  %v3943_v36 = vmul.f32 %v3813_v26, %v3751_v9  ;;  %v3750_v18 = vld [vmem:[%s7646_s17 + $0x40] sm:$0xff]  ;;  %v3944_v34 = vmul.f32 %v3817_v19, %v3752_v33  ;;  %v3946_v41 = vmul.f32 %v3825_v59, %v3754_v51  ;;  %v3759_v33 = vld [vmem:[%s7646_s17 + $0x88] sm:$0xff] }
 0x2f8   : > { %v4678_v42 = vand.u32 4294901760, %v4677_v21  ;;  %6655 = vmatprep.subr.mxu0 %v7268_v1  ;;  %6680 = vmatprep.subr.mxu1 %v7268_v1  ;;  %v3942_v17 = vmul.f32 %v3809_v43, %v3750_v18  ;;  %v3821_v50 = vrot.slane %v3642_v49, %v7672_v16  ;;  %v8536_v22 = vsub.f32 %v602_v2, %v8531_v14 }
 0x2f9   : > { %v3993_v3 = vsel %vm1027_vm1, %v3943_v36, 0.0  ;;  %3982 = vadd.xlane.f32.xlu0 %v3981_v37  ;;  %v3996_v6 = vsel %vm1027_vm1, %v3944_v34, 0.0  ;;  %v4002_v58 = vsel %vm1027_vm1, %v3946_v41, 0.0  ;;  %v3643_v28 = vcombine.high %v8506_v40, %v8506_v40  ;;  %v3762_v41 = vld [vmem:[%s7646_s17 + $0xa0] sm:$0xff] }
 0x2fa   : > { %6648 = vmatmul.mubr.f32.vlgmr.msra.gmra.mxu0 %v4678_v42  ;;  %6673 = vmatmul.mubr.f32.vlgmr.msra.gmra.mxu1 %v8449_v48  ;;  %v3990_v55 = vsel %vm1027_vm1, %v3942_v17, 0.0  ;;  %v3945_v38 = vmul.f32 %v3821_v50, %v3753_v53  ;;  %v5709_v31 = vand.u32 4294901760, %v8536_v22  ;;  %v3760_v42 = vld [vmem:[%s7646_s17 + $0x90] sm:$0xff] }
 0x2fb   : > { %3994 = vadd.xlane.f32.xlu1 %v3993_v3  ;;  %6656 = vmatpush3.msra.mxu0 %v8381_v54  ;;  %v3829_v54 = vrot.slane %v8506_v40, %v7672_v16 }
 0x2fc   : > { %v3526_v52 = vpop.xlane.xlu0 %3525  ;;  %6657 = vmatprep.mubr.msk.f32.mxu0 %vm7270_vm0, %v7268_v1  ;;  %6665 = vmatprep.subr.mxu0 %v7268_v1  ;;  %v3999_v24 = vsel %vm1027_vm1, %v3945_v38, 0.0  ;;  %v5710_v18 = vsub.f32 %v8536_v22, %v5709_v31 }
 0x2fd   : > { %6895 = vrcp.f32 %v3526_v52  ;;  %3985 = vadd.xlane.f32.xlu0 %v3984_v15  ;;  %6681 = vmatpush3.msra.mxu1 %v5215_v45  ;;  %v3947_v4 = vmul.f32 %v3829_v54, %v3755_v56  ;;  %v3837_v45 = vrot.slane %v3643_v28, %v7672_v16  ;;  %v3757_v15 = vld [vmem:[%s7646_s17 + $0x78] sm:$0xff]  ;;  %v3594_v28 = vcombine.high %v8431_v60, %v8431_v60 }
 0x2fe   : > { %6658 = vmatmul.mubr.f32.vlgmr.msra.gmra.mxu0 %v4675_v46  ;;  %6682 = vmatprep.mubr.msk.f32.mxu1 %vm7270_vm0, %v7268_v1  ;;  %v5711_v40 = vand.u32 4294901760, %v5710_v18  ;;  %v3761_v54 = vld [vmem:[%s7646_s17 + $0x98] sm:$0xff] }
 0x2ff   : > { %3997 = vadd.xlane.f32.xlu1 %v3996_v6  ;;  %6666 = vmatpush3.msra.mxu0 %v4717_v27  ;;  %v3641_v27 = vcombine.high %v3625_v35, %v3625_v35  ;;  %v4005_v44 = vsel %vm1027_vm1, %v3947_v4, 0.0 }
 0x300   : > { %6667 = vmatprep.mubr.msk.f32.mxu0 %vm7270_vm0, %v7268_v1  ;;  %6690 = vmatprep.subr.mxu1 %v7268_v1 }
 0x301   : > { %3991 = vadd.xlane.f32.xlu0 %v3990_v55  ;;  %6675 = vmatprep.subr.mxu0 %v7268_v1  ;;  %v3833_v10 = vrot.slane %v3641_v27, %v7672_v16 }
 0x302   : > { %6668 = vmatmul.mubr.f32.vlgmr.msra.gmra.mxu0 %v8449_v48  ;;  %v3756_v48 = vld [vmem:[%s7646_s17 + $0x70] sm:$0xff] }
 0x303   : > { %4003 = vadd.xlane.f32.xlu1 %v4002_v58  ;;  %6676 = vmatpush3.msra.mxu0 %v8423_v20  ;;  %v3948_v0 = vmul.f32 %v3833_v10, %v3756_v48 }
 0x304   : > { %6677 = vmatprep.mubr.msk.f32.mxu0 %vm7270_vm0, %v7268_v1  ;;  %6685 = vmatprep.subr.mxu0 %v7268_v1 }
 0x305   : > { %v4008_v29 = vsel %vm1027_vm1, %v3948_v0, 0.0 }
 0x307   : > { %4000 = vadd.xlane.f32.xlu1 %v3999_v24 }
 0x30a   : > { %v6896_v57 = vpop.eup %6895 }
 0x30b   : > { %v3535_v61 = vmul.f32 %v6896_v57, %v8369_v32  ;;  %4006 = vadd.xlane.f32.xlu1 %v4005_v44 }
 0x30c   : > { %v3529_v46 = vpop.xlane.xlu1 %3528 }
 0x30d   : > { %3540 = vst.msk [vmem:[%s8384_s5 + $0x10] sm:$0xff] %vm1027_vm1, %v3535_v61  ;;  %6897 = vrcp.f32 %v3529_v46  ;;  %v5102_v39 = vsel %vm1027_vm1, %v3535_v61, 0  ;;  %v3651_v62 = vrot.slane %v3535_v61, %v7660_v8  ;;  %v3644_v13 = vcombine.high %v3535_v61, %v3535_v61  ;;  %v3763_v61 = vld [vmem:[%s7646_s17 + $0xa8] sm:$0xff] }
 0x30e   : > { %v8542_v23 = vand.u32 4294901760, %v5102_v39 }
 0x30f   : > { %4009 = vadd.xlane.f32.xlu1 %v4008_v29  ;;  %v3667_v32 = vrot.slane %v3651_v62, %v7660_v8  ;;  %v3659_v9 = vcombine.high %v3651_v62, %v3651_v62  ;;  %v3658_v47 = vrot.slane %v3644_v13, %v7660_v8 }
 0x310   : > { %v5171_v26 = vsub.f32 %v5102_v39, %v8542_v23  ;;  %6683 = vmatmul.mubr.f32.vlgmr.msra.gmra.mxu1 %v8542_v23 }
 0x311   : > { %6691 = vmatpush3.msra.mxu1 %v8423_v20  ;;  %6692 = vmatprep.mubr.msk.f32.mxu1 %vm7270_vm0, %v7268_v1  ;;  %v3841_v21 = vrot.slane %v3667_v32, %v7672_v16  ;;  %v3681_v19 = vrot.slane %v3659_v9, %v7660_v8  ;;  %v3689_v35 = vcombine.high %v3667_v32, %v3667_v32 }
 0x312   : > { %v5172_v36 = vand.u32 4294901760, %v5171_v26  ;;  %6700 = vmatprep.subr.mxu1 %v7268_v1  ;;  %v8562_v37 = vrot.slane %v3658_v47, %v7660_v8  ;;  %v3660_v59 = vcombine.high %v3658_v47, %v3658_v47  ;;  %v3767_v47 = vld [vmem:[%s7646_s17 + $0xc8] sm:$0xff] }
 0x313   : > { %v3950_v30 = vmul.f32 %v3841_v21, %v3758_v5  ;;  %v3845_v43 = vrot.slane %v3681_v19, %v7672_v16  ;;  %v3849_v3 = vrot.slane %v3689_v35, %v7672_v16  ;;  %v3691_v34 = vcombine.high %v3681_v19, %v3681_v19 }
 0x314   : > { %6693 = vmatmul.mubr.f32.vlgmr.msra.gmra.mxu1 %v5172_v36  ;;  %v5173_v12 = vsub.f32 %v5171_v26, %v5172_v36  ;;  %v3857_v17 = vrot.slane %v8562_v37, %v7672_v16  ;;  %v8583_v55 = vrot.slane %v3660_v59, %v7660_v8  ;;  %v3690_v10 = vcombine.high %v8562_v37, %v8562_v37  ;;  %v3768_v37 = vld [vmem:[%s7646_s17 + $0xd0] sm:$0xff] }
 0x315   : > { %v4014_v49 = vsel %vm1027_vm1, %v3950_v30, 0.0  ;;  %6701 = vmatpush3.msra.mxu1 %v8423_v20  ;;  %6702 = vmatprep.mubr.msk.f32.mxu1 %vm7270_vm0, %v7268_v1  ;;  %v3951_v51 = vmul.f32 %v3845_v43, %v3759_v33  ;;  %v3952_v52 = vmul.f32 %v3849_v3, %v3760_v42  ;;  %v3949_v20 = vmul.f32 %v3837_v45, %v3757_v15  ;;  %v3766_v43 = vld [vmem:[%s7646_s17 + $0xc0] sm:$0xff]  ;;  %v3749_v15 = vld [vmem:[%s7646_s17 + $0x38] sm:$0xff] }
 0x316   : > { %4015 = vadd.xlane.f32.xlu0 %v4014_v49  ;;  %v5174_v6 = vand.u32 4294901760, %v5173_v12  ;;  %6710 = vmatprep.subr.mxu1 %v7268_v1  ;;  %v3853_v53 = vrot.slane %v3691_v34, %v7672_v16  ;;  %v3954_v38 = vmul.f32 %v3857_v17, %v3762_v41  ;;  %v3861_v4 = vrot.slane %v8583_v55, %v7672_v16  ;;  %v3770_v49 = vld [vmem:[%s7646_s17 + $0xe0] sm:$0xff] }
 0x317   : > { %v4017_v50 = vsel %vm1027_vm1, %v3951_v51, 0.0  ;;  %v4020_v58 = vsel %vm1027_vm1, %v3952_v52, 0.0  ;;  %v4011_v2 = vsel %vm1027_vm1, %v3949_v20, 0.0  ;;  %v3865_v39 = vrot.slane %v3690_v10, %v7672_v16 }
 0x318   : > { %6678 = vmatmul.mubr.f32.vlgmr.msra.gmra.mxu0 %v5174_v6  ;;  %6703 = vmatmul.mubr.f32.vlgmr.msra.gmra.mxu1 %v8542_v23  ;;  %v3953_v24 = vmul.f32 %v3853_v53, %v3761_v54  ;;  %v3955_v29 = vmul.f32 %v3861_v4, %v3763_v61  ;;  %v3805_v51 = vrot.slane %v3594_v28, %v7672_v16  ;;  %v3769_v53 = vld [vmem:[%s7646_s17 + $0xd8] sm:$0xff] }
 0x319   : > { %4018 = vadd.xlane.f32.xlu1 %v4017_v50  ;;  %6686 = vmatpush3.msra.mxu0 %v8438_v63  ;;  %v3692_v52 = vcombine.high %v8583_v55, %v8583_v55 }
 0x31a   : > { %v6898_v27 = vpop.eup %6897  ;;  %4021 = vadd.xlane.f32.xlu0 %v4020_v58  ;;  %6687 = vmatprep.mubr.msk.f32.mxu0 %vm7270_vm0, %v7268_v1  ;;  %v4023_v13 = vsel %vm1027_vm1, %v3953_v24, 0.0  ;;  %v4029_v36 = vsel %vm1027_vm1, %v3955_v29, 0.0  ;;  %v3941_v20 = vmul.f32 %v3805_v51, %v3749_v15  ;;  %v3765_v58 = vld [vmem:[%s7646_s17 + $0xb8] sm:$0xff] }
 0x31b   : > { %v3537_v56 = vmul.f32 %v6898_v27, %v8373_v11  ;;  %6695 = vmatprep.subr.mxu0 %v7268_v1  ;;  %6711 = vmatpush3.msra.mxu1 %v5711_v40  ;;  %v4026_v11 = vsel %vm1027_vm1, %v3954_v38, 0.0  ;;  %v3869_v55 = vrot.slane %v3692_v52, %v7672_v16 }
 0x31c   : > { %6688 = vmatmul.mubr.f32.vlgmr.msra.gmra.mxu0 %v5171_v26  ;;  %6712 = vmatprep.mubr.msk.f32.mxu1 %vm7270_vm0, %v7268_v1  ;;  %v3764_v26 = vld [vmem:[%s7646_s17 + $0xb0] sm:$0xff]  ;;  %v3987_v54 = vsel %vm1027_vm1, %v3941_v20, 0.0 }
 0x31d   : > { %3541 = vst.msk [vmem:[%s8384_s5 + $0x18] sm:$0xff] %vm1027_vm1, %v3537_v56  ;;  %4012 = vadd.xlane.f32.xlu1 %v4011_v2  ;;  %6696 = vmatpush3.msra.mxu0 %v5213_v25  ;;  %v5598_v48 = vsel %vm1027_vm1, %v3537_v56, 0  ;;  %v3700_v57 = vrot.slane %v3537_v56, %v7660_v8  ;;  %v3693_v44 = vcombine.high %v3537_v56, %v3537_v56  ;;  %v3771_v56 = vld [vmem:[%s7646_s17 + $0xe8] sm:$0xff] }
 0x31e   : > { %4027 = vadd.xlane.f32.xlu0 %v4026_v11  ;;  %6697 = vmatprep.mubr.msk.f32.mxu0 %vm7270_vm0, %v7268_v1  ;;  %v8608_v0 = vand.u32 4294901760, %v5598_v48  ;;  %v3956_v42 = vmul.f32 %v3865_v39, %v3764_v26  ;;  %v3957_v27 = vmul.f32 %v3869_v55, %v3765_v58  ;;  %v3772_v11 = vld [vmem:[%s7646_s17 + $0xf0] sm:$0xff] }
 0x31f   : > { %6720 = vmatprep.subr.mxu1 %v7268_v1  ;;  %6705 = vmatprep.subr.mxu0 %v7268_v1  ;;  %v3708_v46 = vcombine.high %v3700_v57, %v3700_v57  ;;  %v3716_v63 = vrot.slane %v3700_v57, %v7660_v8  ;;  %v3707_v62 = vrot.slane %v3693_v44, %v7660_v8 }
 0x320   : > { %6698 = vmatmul.mubr.f32.vlgmr.msra.gmra.mxu0 %v8542_v23  ;;  %v5667_v25 = vsub.f32 %v5598_v48, %v8608_v0  ;;  %6713 = vmatmul.mubr.f32.vlgmr.msra.gmra.mxu1 %v8608_v0  ;;  %v4032_v34 = vsel %vm1027_vm1, %v3956_v42, 0.0  ;;  %v4035_v10 = vsel %vm1027_vm1, %v3957_v27, 0.0 }
 0x321   : > { %6721 = vmatpush3.msra.mxu1 %v8531_v14  ;;  %6722 = vmatprep.mubr.msk.f32.mxu1 %vm7270_vm0, %v7268_v1  ;;  %v3730_v32 = vrot.slane %v3708_v46, %v7660_v8  ;;  %v3738_v9 = vcombine.high %v3716_v63, %v3716_v63  ;;  %v3723_v35 = vrot.slane %v3707_v62, %v7660_v8 }
 0x322   : > { %4024 = vadd.xlane.f32.xlu0 %v4023_v13  ;;  %6706 = vmatpush3.msra.mxu0 %v8531_v14  ;;  %v5668_v23 = vand.u32 4294901760, %v5667_v25  ;;  %v3873_v60 = vrot.slane %v3716_v63, %v7672_v16  ;;  %v3709_v18 = vcombine.high %v3707_v62, %v3707_v62 }
 0x323   : > { %6730 = vmatprep.subr.mxu1 %v7268_v1  ;;  %6707 = vmatprep.mubr.msk.f32.mxu0 %vm7270_vm0, %v7268_v1  ;;  %v3877_v5 = vrot.slane %v3730_v32, %v7672_v16  ;;  %v3881_v19 = vrot.slane %v3738_v9, %v7672_v16  ;;  %v3889_v12 = vrot.slane %v3723_v35, %v7672_v16 }
 0x324   : > { %6723 = vmatmul.mubr.f32.vlgmr.msra.gmra.mxu1 %v5668_v23  ;;  %6715 = vmatprep.subr.mxu0 %v7268_v1  ;;  %v5669_v21 = vsub.f32 %v5667_v25, %v5668_v23  ;;  %v3740_v45 = vcombine.high %v3730_v32, %v3730_v32  ;;  %v3958_v59 = vmul.f32 %v3873_v60, %v3766_v43 }
 0x325   : > { %6731 = vmatpush3.msra.mxu1 %v8531_v14  ;;  %6732 = vmatprep.mubr.msk.f32.mxu1 %vm7270_vm0, %v7268_v1  ;;  %v3959_v33 = vmul.f32 %v3877_v5, %v3767_v47  ;;  %v3960_v14 = vmul.f32 %v3881_v19, %v3768_v37  ;;  %v3962_v6 = vmul.f32 %v3889_v12, %v3770_v49 }
 0x326   : > { %4030 = vadd.xlane.f32.xlu0 %v4029_v36  ;;  %v5670_v30 = vand.u32 4294901760, %v5669_v21  ;;  %v3885_v41 = vrot.slane %v3740_v45, %v7672_v16  ;;  %v3737_v50 = vrot.slane %v3709_v18, %v7660_v8  ;;  %v4038_v40 = vsel %vm1027_vm1, %v3958_v59, 0.0 }
 0x327   : > { %v4041_v3 = vsel %vm1027_vm1, %v3959_v33, 0.0  ;;  %v4044_v17 = vsel %vm1027_vm1, %v3960_v14, 0.0  ;;  %v4050_v8 = vsel %vm1027_vm1, %v3962_v6, 0.0  ;;  %v3739_v38 = vcombine.high %v3723_v35, %v3723_v35 }
 0x328   : > { %6708 = vmatmul.mubr.f32.vlgmr.msra.gmra.mxu0 %v5670_v30  ;;  %6733 = vmatmul.mubr.f32.vlgmr.msra.gmra.mxu1 %v8608_v0  ;;  %v3741_v4 = vcombine.high %v3737_v50, %v3737_v50 }
 0x329   : > { %6716 = vmatpush3.msra.mxu0 %v8536_v22  ;;  %4042 = vadd.xlane.f32.xlu1 %v4041_v3  ;;  %v3961_v22 = vmul.f32 %v3885_v41, %v3769_v53  ;;  %v3897_v24 = vrot.slane %v3739_v38, %v7672_v16 }
 0x32a   : > { %4033 = vadd.xlane.f32.xlu0 %v4032_v34  ;;  %6717 = vmatprep.mubr.msk.f32.mxu0 %vm7270_vm0, %v7268_v1  ;;  %v3901_v44 = vrot.slane %v3741_v4, %v7672_v16 }
 0x32b   : > { %6725 = vmatprep.subr.mxu0 %v7268_v1  ;;  %v4047_v2 = vsel %vm1027_vm1, %v3961_v22, 0.0  ;;  %v3964_v57 = vmul.f32 %v3897_v24, %v3772_v11 }
 0x32c   : > { %6718 = vmatmul.mubr.f32.vlgmr.msra.gmra.mxu0 %v5667_v25 }
 0x32d   : > { %6726 = vmatpush3.msra.mxu0 %v5709_v31  ;;  %4045 = vadd.xlane.f32.xlu1 %v4044_v17  ;;  %v3893_v31 = vrot.slane %v3737_v50, %v7672_v16  ;;  %v4056_v61 = vsel %vm1027_vm1, %v3964_v57, 0.0 }
 0x32e   : > { %4039 = vadd.xlane.f32.xlu0 %v4038_v40  ;;  %6727 = vmatprep.mubr.msk.f32.mxu0 %vm7270_vm0, %v7268_v1 }
 0x32f   : > { %v3963_v1 = vmul.f32 %v3893_v31, %v3771_v56 }
 0x330   : > { %6728 = vmatmul.mubr.f32.vlgmr.msra.gmra.mxu0 %v8608_v0  ;;  %v3773_v0 = vld [vmem:[%s7646_s17 + $0xf8] sm:$0xff] }
 0x331   : > { %4051 = vadd.xlane.f32.xlu1 %v4050_v8  ;;  %v4053_v48 = vsel %vm1027_vm1, %v3963_v1, 0.0  ;;  %v3965_v46 = vmul.f32 %v3901_v44, %v3773_v0 }
 0x332   : > { %3988 = vadd.xlane.f32.xlu0 %v3987_v54 }
 0x333   : > { %v4059_v63 = vsel %vm1027_vm1, %v3965_v46, 0.0 }
 0x335   : > { %4048 = vadd.xlane.f32.xlu1 %v4047_v2 }
 0x336   : > { %4036 = vadd.xlane.f32.xlu0 %v4035_v10 }
 0x339   : > { %4054 = vadd.xlane.f32.xlu1 %v4053_v48 }
 0x33d   : > { %4057 = vadd.xlane.f32.xlu1 %v4056_v61 }
 0x341   : > { %4060 = vadd.xlane.f32.xlu1 %v4059_v63 }
 0x372   : > { %v8683_v25 = vpop.xlane.xlu0 %3967 }
 0x373   : > { %7108 = shalt.err (!%p7105_p13)
}
 0x374   : > { %s7109_s17 = scalar_lea.hbm %s8693_s7, 512  ;;  %s7113_s5 = scalar_lea.hbm %s9005_s26, 2048 }
 0x375   : > { %p7110_p6 = scmp.ne.s32.totalorder %s8693_s7, %s7109_s17  ;;  %p7114_p7 = scmp.lt.s32.totalorder %s8693_s7, %s9005_s26 }
 0x376   : > { %p7115_p10 = scmp.lt.s32.totalorder %s7113_s5, %s7109_s17 }
 0x377   : > { %p7111_p11 = pnand %p7110_p6, %p7408_p9 }
 0x378   : > { %p7116_p12 = por %p7115_p10, %p7114_p7 }
 0x379   : > { %p7112_p0 = pneg %p7111_p11 }
 0x37b   : > { %p7117_p8 = pnand %p7116_p12, %p7112_p0 }
 0x37d   : > { %7120 = shalt.err (!%p7117_p8)
}
 0x37e   : > { %s7272_s22 = smov 128   ;;  %s7273_s24 = smov 8   ;;  %v3974_v16 = vpop.xlane.xlu0 %3973  ;;  %v3971_v62 = vpop.xlane.xlu1 %3970  ;;  %v4073_v50 = vrot.slane %v8683_v25, %v7658_v7 }
 0x37f   : > { %6750 = dma.vmem_to_hbm [thread:$0]  (%p7408_p9), %s8696_s13, 512, %s8693_s7, %s6056_s9, %s7272_s22, %s7272_s22, %s7273_s24   ;;  %v4077_v15 = vrot.slane %v3971_v62, %v7658_v7  ;;  %v4081_v20 = vrot.slane %v3974_v16, %v7658_v7 }
 0x380   : > { %s8789_s12 = scalar_lea.vmem [#allocation14], %s7614_s15  ;;  %s9006_s7 = sld [smem:[#allocation42_spill]] }
 0x381   : > { %v4102_v58 = vsel %vm1166_vm2, %v4077_v15, %v4073_v50  ;;  %s6071_s15 = sshll.u32 %s8789_s12, 4  ;;  %s6051_s9 = scalar_lea.sflag [#allocation4], %s7611_s25  ;;  %s8837_s15 = int_to_ptr.vmem [resolvable:$true] %s6071_s15 }
 0x382   : > { %v8724_v39 = vpop.xlane.xlu0 %3979  ;;  %v4103_v24 = vsel %vm1168_vm3, %v4081_v20, %v4102_v58  ;;  %s7121_s11 = scalar_lea.vmem %s8837_s15, 512  ;;  %s7274_s19 = smov [#allocation14]  }
 0x383   : > { %v4089_v61 = vrot.slane %v8724_v39, %v7658_v7  ;;  %p7122_p5 = scmp.ne.s32.totalorder %s8837_s15, %s7121_s11  ;;  %s7125_s28 = sshll.u32 %s7274_s19, 4  ;;  %s7126_s28 = int_to_ptr.vmem [resolvable:$false] %s7125_s28 }
 0x384   : > { %v3995_v29 = vpop.xlane.xlu1 %3994  ;;  %s7127_s16 = scalar_lea.vmem %s7126_s28, 1024  ;;  %p7128_p4 = scmp.lt.s32.totalorder %s8837_s15, %s7126_s28 }
 0x385   : > { %v4573_v18 = vrot.slane %v3995_v29, %v7658_v7  ;;  %p7123_p2 = pnand %p7122_p5, %p7408_p9  ;;  %p7129_p1 = scmp.lt.s32.totalorder %s7127_s16, %s7121_s11 }
 0x386   : > { %v3977_v13 = vpop.xlane.xlu0 %3976  ;;  %s8844_s13 = scalar_lea.hbm %s9006_s7, %s6390_s20 }
 0x387   : > { %v4085_v8 = vrot.slane %v3977_v13, %v7658_v7  ;;  %p7124_p3 = pneg %p7123_p2  ;;  %p7130_p13 = por %p7129_p1, %p7128_p4 }
 0x388   : > { %v3998_v9 = vpop.xlane.xlu1 %3997 }
 0x389   : > { %v4577_v49 = vrot.slane %v3998_v9, %v7658_v7  ;;  %v4104_v48 = vsel %vm1170_vm4, %v4085_v8, %v4103_v24  ;;  %p7131_p6 = pnand %p7130_p13, %p7124_p3 }
 0x38a   : > { %v8726_v32 = vpop.xlane.xlu0 %3982  ;;  %v4105_v62 = vsel %vm1172_vm5, %v4089_v61, %v4104_v48 }
 0x38b   : > { %v4093_v57 = vrot.slane %v8726_v32, %v7658_v7 }
 0x38c   : > { %v4004_v47 = vpop.xlane.xlu1 %4003 }
 0x38d   : > { %v4585_v27 = vrot.slane %v4004_v47, %v7658_v7  ;;  %v4106_v32 = vsel %vm1174_vm6, %v4093_v57, %v4105_v62 }
 0x38e   : > { %v8728_v23 = vpop.xlane.xlu0 %3985 }
 0x38f   : > { %v4097_v46 = vrot.slane %v8728_v23, %v7658_v7 }
 0x390   : > { %v4001_v5 = vpop.xlane.xlu1 %4000 }
 0x391   : > { %v4581_v17 = vrot.slane %v4001_v5, %v7658_v7  ;;  %v4107_v39 = vsel %vm1176_vm7, %v4097_v46, %v4106_v32 }
 0x392   : > { %v3992_v26 = vpop.xlane.xlu0 %3991 }
 0x393   : > { %v4569_v30 = vrot.slane %v3992_v26, %v7658_v7 }
 0x394   : > { %v4007_v21 = vpop.xlane.xlu1 %4006 }
 0x395   : > { %v4598_v34 = vsel %vm1166_vm2, %v4573_v18, %v4569_v30  ;;  %v4589_v31 = vrot.slane %v4007_v21, %v7658_v7 }
 0x396   : > { %v4599_v6 = vsel %vm1168_vm3, %v4577_v49, %v4598_v34 }
 0x397   : > { %v4600_v22 = vsel %vm1170_vm4, %v4581_v17, %v4599_v6 }
 0x398   : > { %v4010_v37 = vpop.xlane.xlu1 %4009  ;;  %v4601_v4 = vsel %vm1172_vm5, %v4585_v27, %v4600_v22 }
 0x399   : > { %v4593_v56 = vrot.slane %v4010_v37, %v7658_v7  ;;  %v4602_v44 = vsel %vm1174_vm6, %v4589_v31, %v4601_v4 }
 0x39b   : > { %v4603_v63 = vsel %vm1176_vm7, %v4593_v56, %v4602_v44 }
 0x39f   : > { %v8730_v28 = vpop.xlane.xlu0 %4015 }
 0x3a2   : > { %v8746_v12 = vpop.xlane.xlu1 %4018 }
 0x3a3   : > { %v8732_v19 = vpop.xlane.xlu0 %4021  ;;  %v8734_v35 = vpop.f32.mrf.mxu1 }
 0x3a5   : > { %v6624_v36 = vpop.f32.mrf.mxu1 }
 0x3a6   : > { %v4013_v53 = vpop.xlane.xlu1 %4012 }
 0x3a7   : > { %v8736_v33 = vpop.xlane.xlu0 %4027  ;;  %v8738_v42 = vpop.f32.mrf.mxu1  ;;  %v4597_v2 = vrot.slane %v4013_v53, %v7658_v7 }
 0x3a9   : > { %v6634_v60 = vpop.f32.mrf.mxu1  ;;  %v4604_v25 = vsel %vm1178_vm8, %v4597_v2, %v4603_v63 }
 0x3ab   : > { %v8741_v43 = vpop.xlane.xlu0 %4024  ;;  %v4184_v3 = vpop.f32.mrf.mxu0 }
 0x3ac   : > { %v8744_v14 = vpop.f32.mrf.mxu1  ;;  %v5077_v58 = vrot.slane %v8741_v43, %v7658_v7 }
 0x3ad   : > { %v6619_v45 = vpop.f32.mrf.mxu0 }
 0x3ae   : > { %v6644_v59 = vpop.f32.mrf.mxu1 }
 0x3af   : > { %v8750_v51 = vpop.xlane.xlu0 %4030  ;;  %v4334_v52 = vpop.f32.mrf.mxu0 }
 0x3b1   : > { %v6629_v41 = vpop.f32.mrf.mxu0 }
 0x3b2   : > { %v4756_v40 = vpop.f32.mrf.mxu1  ;;  %v4043_v5 = vpop.xlane.xlu1 %4042 }
 0x3b3   : > { %v8758_v55 = vpop.xlane.xlu0 %4033  ;;  %v5565_v46 = vrot.slane %v4043_v5, %v7658_v7 }
 0x3b4   : > { %v6654_v38 = vpop.f32.mrf.mxu1  ;;  %v4482_v54 = vpop.f32.mrf.mxu0 }
 0x3b5   : > { %v5085_v38 = vrot.slane %v8750_v51, %v7658_v7 }
 0x3b6   : > { %v4904_v1 = vpop.f32.mrf.mxu1  ;;  %v6639_v11 = vpop.f32.mrf.mxu0 }
 0x3b7   : > { %v8769_v10 = vpop.xlane.xlu0 %4039  ;;  %v4046_v49 = vpop.xlane.xlu1 %4045 }
 0x3b8   : > { %v6664_v0 = vpop.f32.mrf.mxu1 }
 0x3ba   : > { %v4680_v16 = vpop.f32.mrf.mxu0  ;;  %v5050_v9 = vpop.f32.mrf.mxu1 }
 0x3bb   : > { %v3989_v13 = vpop.xlane.xlu0 %3988  ;;  %v4681_v29 = vadd.f32 %v4680_v16, %v4604_v25 }
 0x3bc   : > { %v4101_v47 = vrot.slane %v3989_v13, %v7658_v7  ;;  %v6649_v26 = vpop.f32.mrf.mxu0  ;;  %v6674_v21 = vpop.f32.mrf.mxu1 }
 0x3bd   : > { %v4757_v23 = vadd.f32 %v4756_v40, %v4681_v29  ;;  %v5569_v29 = vrot.slane %v4046_v49, %v7658_v7 }
 0x3be   : > { %v4108_v36 = vsel %vm1178_vm8, %v4101_v47, %v4107_v39  ;;  %v4830_v37 = vpop.f32.mrf.mxu0 }
 0x3bf   : > { %v4185_v60 = vadd.f32 %v4184_v3, %v4108_v36  ;;  %v4831_v30 = vadd.f32 %v4830_v37, %v4757_v23  ;;  %v4052_v3 = vpop.xlane.xlu1 %4051  ;;  %v4037_v31 = vpop.xlane.xlu0 %4036 }
 0x3c0   : > { %v6659_v18 = vpop.f32.mrf.mxu0  ;;  %v5093_v27 = vrot.slane %v4037_v31, %v7658_v7  ;;  %v5577_v37 = vrot.slane %v4052_v3, %v7658_v7 }
 0x3c1   : > { %v4261_v45 = vadd.f32 %v8734_v35, %v4185_v60  ;;  %v4905_v34 = vadd.f32 %v4904_v1, %v4831_v30  ;;  %v5069_v35 = vrot.slane %v8746_v12, %v7658_v7 }
 0x3c2   : > { %v4978_v59 = vpop.f32.mrf.mxu0 }
 0x3c3   : > { %v4335_v15 = vadd.f32 %v4334_v52, %v4261_v45  ;;  %v4979_v17 = vadd.f32 %v4978_v59, %v4905_v34  ;;  %v5065_v52 = vrot.slane %v8730_v28, %v7658_v7  ;;  %v4049_v8 = vpop.xlane.xlu1 %4048  ;;  %v5081_v28 = vrot.slane %v8736_v33, %v7658_v7 }
 0x3c4   : > { %v6669_v6 = vpop.f32.mrf.mxu0  ;;  %v5561_v33 = vrot.slane %v8769_v10, %v7658_v7  ;;  %v5573_v62 = vrot.slane %v4049_v8, %v7658_v7 }
 0x3c5   : > { %v4409_v41 = vadd.f32 %v8738_v42, %v4335_v15  ;;  %v5051_v50 = vadd.f32 %v5050_v9, %v4979_v17  ;;  %v5073_v42 = vrot.slane %v8732_v19, %v7658_v7  ;;  %v5094_v53 = vsel %vm1166_vm2, %v5069_v35, %v5065_v52 }
 0x3c6   : > { %v5089_v19 = vrot.slane %v8758_v55, %v7658_v7  ;;  %v5590_v16 = vsel %vm1166_vm2, %v5565_v46, %v5561_v33 }
 0x3c7   : > { %v4483_v20 = vadd.f32 %v4482_v54, %v4409_v41  ;;  %6047 = vst.msk [vmem:[%s8789_s12 + $0x8] sm:$0xff] %vm1027_vm1, %v5051_v50  ;;  %v4055_v2 = vpop.xlane.xlu1 %4054  ;;  %v5591_v10 = vsel %vm1168_vm3, %v5569_v29, %v5590_v16 }
 0x3c8   : > { %v5592_v21 = vsel %vm1170_vm4, %v5573_v62, %v5591_v10  ;;  %v5581_v5 = vrot.slane %v4055_v2, %v7658_v7 }
 0x3c9   : > { %v4555_v40 = vadd.f32 %v8744_v14, %v4483_v20  ;;  %v5095_v14 = vsel %vm1168_vm3, %v5073_v42, %v5094_v53  ;;  %v5593_v34 = vsel %vm1172_vm5, %v5577_v37, %v5592_v21 }
 0x3ca   : > { %v5096_v12 = vsel %vm1170_vm4, %v5077_v58, %v5095_v14  ;;  %v5594_v59 = vsel %vm1174_vm6, %v5581_v5, %v5593_v34 }
 0x3cb   : > { %6046 = vst.msk [vmem:[%s8789_s12] sm:$0xff] %vm1027_vm1, %v4555_v40  ;;  %v5097_v56 = vsel %vm1172_vm5, %v5081_v28, %v5096_v12  ;;  %v4058_v0 = vpop.xlane.xlu1 %4057 }
 0x3cc   : > { %v5098_v1 = vsel %vm1174_vm6, %v5085_v38, %v5097_v56  ;;  %v5585_v60 = vrot.slane %v4058_v0, %v7658_v7 }
 0x3cd   : > { %v5099_v4 = vsel %vm1176_vm7, %v5089_v19, %v5098_v1 }
 0x3ce   : > { %v5100_v51 = vsel %vm1178_vm8, %v5093_v27, %v5099_v4  ;;  %v5595_v15 = vsel %vm1176_vm7, %v5585_v60, %v5594_v59 }
 0x3cf   : > { %v4061_v26 = vpop.xlane.xlu1 %4060 }
 0x3d0   : > { %v5252_v22 = vpop.f32.mrf.mxu1  ;;  %v5589_v18 = vrot.slane %v4061_v26, %v7658_v7 }
 0x3d2   : > { %v6684_v54 = vpop.f32.mrf.mxu1  ;;  %v5596_v17 = vsel %vm1178_vm8, %v5589_v18, %v5595_v15 }
 0x3d4   : > { %v5400_v43 = vpop.f32.mrf.mxu1 }
 0x3d6   : > { %v6694_v24 = vpop.f32.mrf.mxu1 }
 0x3d8   : > { %v5176_v11 = vpop.f32.mrf.mxu0  ;;  %v5546_v48 = vpop.f32.mrf.mxu1 }
 0x3d9   : > { %v5177_v57 = vadd.f32 %v5176_v11, %v5100_v51 }
 0x3da   : > { %v6679_v55 = vpop.f32.mrf.mxu0  ;;  %v6704_v44 = vpop.f32.mrf.mxu1 }
 0x3db   : > { %v5253_v61 = vadd.f32 %v5252_v22, %v5177_v57 }
 0x3dc   : > { %v5326_v63 = vpop.f32.mrf.mxu0 }
 0x3dd   : > { %v5327_v25 = vadd.f32 %v5326_v63, %v5253_v61 }
 0x3de   : > { %v6689_v13 = vpop.f32.mrf.mxu0 }
 0x3df   : > { %v5401_v9 = vadd.f32 %v5400_v43, %v5327_v25 }
 0x3e0   : > { %v5474_v32 = vpop.f32.mrf.mxu0  ;;  %v5748_v47 = vpop.f32.mrf.mxu1 }
 0x3e1   : > { %v5475_v39 = vadd.f32 %v5474_v32, %v5401_v9 }
 0x3e2   : > { %v6699_v23 = vpop.f32.mrf.mxu0  ;;  %v6714_v36 = vpop.f32.mrf.mxu1 }
 0x3e3   : > { %v5547_v30 = vadd.f32 %v5546_v48, %v5475_v39 }
 0x3e4   : > { %v5896_v45 = vpop.f32.mrf.mxu1 }
 0x3e5   : > { %6048 = vst.msk [vmem:[%s8789_s12 + $0x10] sm:$0xff] %vm1027_vm1, %v5547_v30 }
 0x3e6   : > { %v6724_v49 = vpop.f32.mrf.mxu1 }
 0x3e8   : > { %v5672_v6 = vpop.f32.mrf.mxu0  ;;  %v6042_v41 = vpop.f32.mrf.mxu1 }
 0x3e9   : > { %v5673_v50 = vadd.f32 %v5672_v6, %v5596_v17 }
 0x3ea   : > { %v6709_v7 = vpop.f32.mrf.mxu0  ;;  %v6734_v20 = vpop.f32.mrf.mxu1 }
 0x3eb   : > { %v5749_v3 = vadd.f32 %v5748_v47, %v5673_v50 }
 0x3ec   : > { %v5822_v40 = vpop.f32.mrf.mxu0 }
 0x3ed   : > { %v5823_v35 = vadd.f32 %v5822_v40, %v5749_v3 }
 0x3ee   : > { %v6719_v52 = vpop.f32.mrf.mxu0 }
 0x3ef   : > { %v5897_v42 = vadd.f32 %v5896_v45, %v5823_v35 }
 0x3f0   : > { %v5970_v53 = vpop.f32.mrf.mxu0 }
 0x3f1   : > { %v5971_v58 = vadd.f32 %v5970_v53, %v5897_v42 }
 0x3f2   : > { %v6729_v8 = vpop.f32.mrf.mxu0 }
 0x3f3   : > { %v6043_v22 = vadd.f32 %v6042_v41, %v5971_v58 }
 0x3f5   : > { %6049 = vst.msk [vmem:[%s8789_s12 + $0x18] sm:$0xff] %vm1027_vm1, %v6043_v22 }
 0x3f6   : > { %7134 = shalt.err (!%p7131_p6)
}
 0x3f7   : > { %s7135_s1 = scalar_lea.hbm %s8844_s13, 512  ;;  %s7139_s17 = scalar_lea.hbm %s9006_s7, 2048 }
 0x3f8   : > { %p7136_p11 = scmp.ne.s32.totalorder %s8844_s13, %s7135_s1  ;;  %p7140_p10 = scmp.lt.s32.totalorder %s8844_s13, %s9006_s7 }
 0x3f9   : > { %p7141_p12 = scmp.lt.s32.totalorder %s7139_s17, %s7135_s1 }
 0x3fa   : > { %p7137_p0 = pnand %p7136_p11, %p7408_p9 }
 0x3fb   : > { %p7142_p8 = por %p7141_p12, %p7140_p10 }
 0x3fc   : > { %p7138_p7 = pneg %p7137_p0 }
 0x3fe   : > { %p7143_p5 = pnand %p7142_p8, %p7138_p7 }
 0x400   : > { %7146 = shalt.err (!%p7143_p5)
}
 0x401   : > { %6749 = dma.vmem_to_hbm [thread:$0]  (%p7408_p9), %s8837_s15, 512, %s8844_s13, %s6051_s9, %s7272_s22, %s7272_s22, %s7273_s24  }
 0x402 PF: > { %s9007_s5 = sld [smem:[#allocation29_spill]] }
 0x403   : > { %s9008_s8 = sld [smem:[#allocation24_spill]] }
 0x404   : > { %s9009_s3 = sld [smem:[#allocation35_spill]] }
 0x408   : > { %p6783_p2 = scmp.ge.s32.totalorder %s9007_s5, 2 }
 0x409   : > { %s6104_s12 = sand.u32 1, %s9008_s8  }
 0x40a   : > { %p9010_p3 = scmp.ne.s32.totalorder %s9009_s3, 0  ;;  %s6105_s18 = scalar_lea.sflag [#allocation4], %s6104_s12 }
 0x40c   : > { %p6776_p4 = pnand %p6783_p2, %p9010_p3 }
 0x40e   : > { %p6777_p1 = pneg %p6776_p4 }
 0x410   : > { %7208 = dma.done.wait (%p6777_p1), %s6105_s18, 512  }
 0x411   : > { %7210 = vsyncadd (%p6777_p1), %s6105_s18, 4294966784  ;;  %s6114_s27 = scalar_lea.sflag [#allocation16], %s6104_s12 }
 0x412   : > { %7212 = dma.done.wait (%p6777_p1), %s6114_s27, 512  }
 0x413   : > { %7214 = vsyncadd (%p6777_p1), %s6114_s27, 4294966784  ;;  %s37_s15 = sadd.s32 1, %s9007_s5   ;;  %s9011_s27 = sld [smem:[#allocation23_spill]] }
 0x414   : > { %p34_p13 = scmp.ge.s32.totalorder %s37_s15, 6   ;;  %s9012_s30 = sld [smem:[#allocation37_spill]] }
 0x415   : > { %s9013_s22 = sld [smem:[#allocation25_spill]]  ;;  %s9018_s28 = smov %s7225_s29 }
 0x416   : > { %s9014_s24 = sld [smem:[#allocation36_spill]]  ;;  %s9021_s9 = smov %s7237_s10 }
 0x417   : > { %s9015_s11 = sld [smem:[#allocation28_spill]]  ;;  %s9023_s12 = smov %s7253_s14 }
 0x418   : > { %s9016_s13 = sld [smem:[#allocation31_spill]] }
 0x419   : > { %s9017_s19 = sld [smem:[#allocation32_spill]] }
 0x41a   : > { %s9019_s29 = smov %s9012_s30 }
 0x41b   : > { %s9020_s30 = smov %s9013_s22  ;;  %36 = sbr.rel (!%p34_p13) target bundleno = 23 (0x17), region = 182 }
 0x41c   : > { %s9022_s10 = smov %s9014_s24 }
 0x41f   : > { %s9024_s14 = smov %s9017_s19 }
 0x420   :  { %6119 = vsyncpa [#allocation3], 1 }
 0x421   :  { %6121 = vsyncpa [#allocation3 + $0x1], 1 }
 0x422   :  { %6122 = vsyncpa [#allocation6], 1 }
 0x423   :  { %6124 = vsyncpa [#allocation6 + $0x1], 1 }
 0x424   :  { %6125 = vsyncpa [#allocation9], 1 }
 0x425   :  { %6127 = vsyncpa [#allocation9 + $0x1], 1 }
 0x426   :  { %6128 = vsyncpa [#allocation12], 1 }
 0x427   :  { %6130 = vsyncpa [#allocation12 + $0x1], 1 }
 0x428   :  { %6131 = vsyncpa [#allocation4], 1 }
 0x429   :  { %6133 = vsyncpa [#allocation4 + $0x1], 1 }
 0x42a   :  { %6134 = vsyncpa [#allocation16], 1 }
 0x42b   :  { %6136 = vsyncpa [#allocation16 + $0x1], 1 }

</bundles_post_ra>
